<compile_context>
chip_gen: v6e
topology: v6e:2x2x1
jax: 0.10.0
libtpu: 0.0.40
codegen_flags: <defaults>
</compile_context>

<pallas_src>
import functools

import jax
import jax.numpy as jnp
from jax.experimental import pallas as pl
from jax.experimental.pallas import tpu as pltpu


def _bilstm_kernel(gf_ref, gr_ref,          # (TT, B, 4H) gate blocks (fwd / rev)
                   whf_ref, whr_ref,        # (H, 4H) recurrent weights
                   h0_ref, c0_ref,          # (2, B, H) initial states
                   outf_ref, outr_ref,      # (TT, B, H) per-step hidden outputs
                   hy_ref, cy_ref,          # (2, B, H) final states
                   hf, cf, hr, cr,          # (B, H) f32 VMEM scratch (resident)
                   *, tt):
    s = pl.program_id(0)
    H = hf.shape[-1]

    @pl.when(s == 0)
    def _init():
        hf[...] = h0_ref[0]
        cf[...] = c0_ref[0]
        hr[...] = h0_ref[1]
        cr[...] = c0_ref[1]

    def cell(gates_in, h, c, w_hh):
        # Only the recurrent matmul is on the serial critical path now.
        gates = gates_in + jnp.dot(h, w_hh, preferred_element_type=jnp.float32)
        i = jax.nn.sigmoid(gates[:, 0 * H:1 * H])
        f = jax.nn.sigmoid(gates[:, 1 * H:2 * H])
        g = jnp.tanh(gates[:, 2 * H:3 * H])
        o = jax.nn.sigmoid(gates[:, 3 * H:4 * H])
        c_new = f * c + i * g
        h_new = o * jnp.tanh(c_new)
        return h_new, c_new

    # TT timesteps per grid iteration, fully unrolled (static indices).
    # Forward consumes local index j (global time s*TT + j); reverse consumes
    # local index TT-1-j of its mirrored block (global time T-1 - (s*TT + j)).
    for j in range(tt):
        h_f, c_f = cell(gf_ref[j], hf[...], cf[...], whf_ref[...])
        hf[...] = h_f
        cf[...] = c_f
        outf_ref[j] = h_f

        jr = tt - 1 - j
        h_r, c_r = cell(gr_ref[jr], hr[...], cr[...], whr_ref[...])
        hr[...] = h_r
        cr[...] = c_r
        outr_ref[jr] = h_r

    # Final states: only materialized on the last grid step (block is
    # VMEM-resident with a constant index map, flushed once at grid end).
    @pl.when(s == pl.num_programs(0) - 1)
    def _final():
        hy_ref[0] = hf[...]
        hy_ref[1] = hr[...]
        cy_ref[0] = cf[...]
        cy_ref[1] = cr[...]


def bilstm_forward(inputs, hx, cx,
                   w_ih_f, w_hh_f, b_f,
                   w_ih_r, w_hh_r, b_r,
                   *, tt=4):
    """Bidirectional LSTM forward. Returns (out, (hy, cy)) like BiLSTMLayer."""
    T, B, I = inputs.shape
    H = hx.shape[-1]
    G = 4 * H

    # --- sublane-dense batch: pad B up to a multiple of 8 --------------------
    Bp = max(8, ((B + 7) // 8) * 8)
    if Bp != B:
        pad = Bp - B
        inputs = jnp.pad(inputs, ((0, 0), (0, pad), (0, 0)))
        hx = jnp.pad(hx, ((0, 0), (0, pad), (0, 0)))
        cx = jnp.pad(cx, ((0, 0), (0, pad), (0, 0)))

    # --- hoisted input projection: one big matmul per direction --------------
    x2 = inputs.reshape(T * Bp, I)
    gates_f = (x2 @ w_ih_f + b_f).reshape(T, Bp, G)
    gates_r = (x2 @ w_ih_r + b_r).reshape(T, Bp, G)

    # --- time blocking --------------------------------------------------------
    tt = max(1, min(tt, T))
    while T % tt:
        tt -= 1
    NT = T // tt

    full = lambda shape: pl.BlockSpec(shape, lambda s: (0,) * len(shape))

    grid_spec = pltpu.PrefetchScalarGridSpec(
        num_scalar_prefetch=0,
        grid=(NT,),
        in_specs=[
            pl.BlockSpec((tt, Bp, G), lambda s: (s, 0, 0)),            # fwd gates
            pl.BlockSpec((tt, Bp, G), lambda s: (NT - 1 - s, 0, 0)),   # rev gates
            full((H, G)), full((H, G)),                                # W_hh f/r
            full((2, Bp, H)), full((2, Bp, H)),                        # h0, c0
        ],
        out_specs=[
            pl.BlockSpec((tt, Bp, H), lambda s: (s, 0, 0)),            # out_f
            pl.BlockSpec((tt, Bp, H), lambda s: (NT - 1 - s, 0, 0)),   # out_r
            full((2, Bp, H)),                                          # hy
            full((2, Bp, H)),                                          # cy
        ],
        scratch_shapes=[pltpu.VMEM((Bp, H), jnp.float32)] * 4,
    )

    out_f, out_r, hy, cy = pl.pallas_call(
        functools.partial(_bilstm_kernel, tt=tt),
        out_shape=(
            jax.ShapeDtypeStruct((T, Bp, H), jnp.float32),
            jax.ShapeDtypeStruct((T, Bp, H), jnp.float32),
            jax.ShapeDtypeStruct((2, Bp, H), jnp.float32),
            jax.ShapeDtypeStruct((2, Bp, H), jnp.float32),
        ),
        grid_spec=grid_spec,
        compiler_params=pltpu.CompilerParams(
            dimension_semantics=("arbitrary",),      # sequential recurrence
            vmem_limit_bytes=64 * 1024 * 1024,
        ),
    )(gates_f, gates_r, w_hh_f, w_hh_r, hx, cx)

    # Glue to match the PyTorch module output.  If downstream consumes the
    # (out_f, out_r) pair directly, drop this concat to save an HBM round-trip.
    out = jnp.concatenate([out_f, out_r], axis=-1)   # (T, Bp, 2H)

    if Bp != B:
        out = out[:, :B]
        hy = hy[:, :B]
        cy = cy[:, :B]
    return out, (hy, cy)


# ---------- pure-JAX reference (mirrors the PyTorch module exactly) ----------
def _ref_cell(x, h, c, w_ih, w_hh, b):
    H = h.shape[-1]
    gates = x @ w_ih + h @ w_hh + b
    i = jax.nn.sigmoid(gates[:, :H])
    f = jax.nn.sigmoid(gates[:, H:2 * H])
    g = jnp.tanh(gates[:, 2 * H:3 * H])
    o = jax.nn.sigmoid(gates[:, 3 * H:])
    c_new = f * c + i * g
    h_new = o * jnp.tanh(c_new)
    return h_new, c_new


def _ref_layer(inputs, h, c, w_ih, w_hh, b, reverse):
    xs = jnp.flip(inputs, axis=0) if reverse else inputs

    def step(carry, x):
        h, c = carry
        h, c = _ref_cell(x, h, c, w_ih, w_hh, b)
        return (h, c), h

    (h, c), outs = jax.lax.scan(step, (h, c), xs)
    if reverse:
        outs = jnp.flip(outs, axis=0)
    return outs, (h, c)


def bilstm_reference(inputs, hx, cx, w_ih_f, w_hh_f, b_f, w_ih_r, w_hh_r, b_r):
    out_f, (hf, cf) = _ref_layer(inputs, hx[0], cx[0], w_ih_f, w_hh_f, b_f,
                                 reverse=False)
    out_r, (hr, cr) = _ref_layer(inputs, hx[1], cx[1], w_ih_r, w_hh_r, b_r,
                                 reverse=True)
    out = jnp.concatenate([out_f, out_r], axis=-1)
    hy = jnp.stack([hf, hr], axis=0)
    cy = jnp.stack([cf, cr], axis=0)
    return out, (hy, cy)


if __name__ == "__main__":
    # Small deterministic problem: T=16 steps, B=8 batch, I=16 input, H=32 hidden
    # (4H = 128 -> lane-dense gate blocks; B=8 -> sublane-dense operands).
    T, B, I, H = 16, 8, 16, 32
    G = 4 * H

    key = jax.random.PRNGKey(0)
    keys = jax.random.split(key, 12)
    scale = 1.0 / jnp.sqrt(H)

    inputs = jax.random.normal(keys[0], (T, B, I), dtype=jnp.float32)
    hx = jax.random.normal(keys[1], (2, B, H), dtype=jnp.float32)
    cx = jax.random.normal(keys[2], (2, B, H), dtype=jnp.float32)

    def uni(k, shape):
        return jax.random.uniform(k, shape, jnp.float32, -scale, scale)

    # torch.nn.LSTMCell has W_ih (4H, I), W_hh (4H, H), b_ih (4H,), b_hh (4H,).
    # We keep them transposed and fold the two biases into one per direction.
    w_ih_f = uni(keys[3], (I, G))
    w_hh_f = uni(keys[4], (H, G))
    b_f = uni(keys[5], (1, G)) + uni(keys[6], (1, G))
    w_ih_r = uni(keys[7], (I, G))
    w_hh_r = uni(keys[8], (H, G))
    b_r = uni(keys[9], (1, G)) + uni(keys[10], (1, G))

    out, (hy, cy) = bilstm_forward(inputs, hx, cx,
                                   w_ih_f, w_hh_f, b_f,
                                   w_ih_r, w_hh_r, b_r,
                                   tt=4)
    jax.block_until_ready(out)
    jax.block_until_ready(hy)
    jax.block_until_ready(cy)

    out_ref, (hy_ref, cy_ref) = bilstm_reference(
        inputs, hx, cx, w_ih_f, w_hh_f, b_f, w_ih_r, w_hh_r, b_r)

    assert out.shape == (T, B, 2 * H)
    assert hy.shape == (2, B, H) and cy.shape == (2, B, H)
    assert jnp.allclose(out, out_ref, atol=1e-5, rtol=1e-5)
    assert jnp.allclose(hy, hy_ref, atol=1e-5, rtol=1e-5)
    assert jnp.allclose(cy, cy_ref, atol=1e-5, rtol=1e-5)

    print("KERNEL_OK")
</pallas_src>

<mosaic_0001>
module attributes {stable_mosaic.version = 11 : i64} {
  func.func @_bilstm_kernel(%arg0: i32, %arg1: memref<4x8x128xf32, #tpu.memory_space<vmem>>, %arg2: memref<4x8x128xf32, #tpu.memory_space<vmem>>, %arg3: memref<32x128xf32, #tpu.memory_space<vmem>>, %arg4: memref<32x128xf32, #tpu.memory_space<vmem>>, %arg5: memref<2x8x32xf32, #tpu.memory_space<vmem>>, %arg6: memref<2x8x32xf32, #tpu.memory_space<vmem>>, %arg7: memref<4x8x32xf32, #tpu.memory_space<vmem>>, %arg8: memref<4x8x32xf32, #tpu.memory_space<vmem>>, %arg9: memref<2x8x32xf32, #tpu.memory_space<vmem>>, %arg10: memref<2x8x32xf32, #tpu.memory_space<vmem>>, %arg11: memref<8x32xf32, #tpu.memory_space<vmem>>, %arg12: memref<8x32xf32, #tpu.memory_space<vmem>>, %arg13: memref<8x32xf32, #tpu.memory_space<vmem>>, %arg14: memref<8x32xf32, #tpu.memory_space<vmem>>) attributes {dimension_semantics = [#tpu.dimension_semantics<arbitrary>], iteration_bounds = array<i64: 4>, scalar_prefetch = 0 : i64, scratch_operands = 4 : i64, tpu.core_type = #tpu.core_type<tc>, window_params = [{transform_indices = @transform_0, window_bounds = array<i64: 4, 8, 128>}, {transform_indices = @transform_1, window_bounds = array<i64: 4, 8, 128>}, {pipeline_mode = #tpu.pipeline_mode<synchronous>, transform_indices = @transform_2, window_bounds = array<i64: 32, 128>}, {pipeline_mode = #tpu.pipeline_mode<synchronous>, transform_indices = @transform_3, window_bounds = array<i64: 32, 128>}, {pipeline_mode = #tpu.pipeline_mode<synchronous>, transform_indices = @transform_4, window_bounds = array<i64: 2, 8, 32>}, {pipeline_mode = #tpu.pipeline_mode<synchronous>, transform_indices = @transform_5, window_bounds = array<i64: 2, 8, 32>}, {transform_indices = @transform_6, window_bounds = array<i64: 4, 8, 32>}, {transform_indices = @transform_7, window_bounds = array<i64: 4, 8, 32>}, {pipeline_mode = #tpu.pipeline_mode<synchronous>, transform_indices = @transform_8, window_bounds = array<i64: 2, 8, 32>}, {pipeline_mode = #tpu.pipeline_mode<synchronous>, transform_indices = @transform_9, window_bounds = array<i64: 2, 8, 32>}]} {
    %c0_i32 = arith.constant 0 : i32
    %0 = arith.cmpi eq, %arg0, %c0_i32 : i32
    %1 = arith.extui %0 : i1 to i32
    %c0_i32_0 = arith.constant 0 : i32
    %2 = arith.cmpi ne, %1, %c0_i32_0 : i32
    scf.if %2 {
      %c0_157 = arith.constant 0 : index
      %c0_158 = arith.constant 0 : index
      %c0_159 = arith.constant 0 : index
      %302 = vector.load %arg5[%c0_157, %c0_158, %c0_159] : memref<2x8x32xf32, #tpu.memory_space<vmem>>, vector<1x8x32xf32>
      %303 = vector.shape_cast %302 : vector<1x8x32xf32> to vector<8x32xf32>
      %c0_160 = arith.constant 0 : index
      %c0_161 = arith.constant 0 : index
      %304 = vector.load %arg11[%c0_160, %c0_161] : memref<8x32xf32, #tpu.memory_space<vmem>>, vector<8x32xf32>
      tpu.vector_store %arg11[%c0_160, %c0_161], %303 {strides = array<i32>} : memref<8x32xf32, #tpu.memory_space<vmem>>, vector<8x32xf32>,
      %c0_162 = arith.constant 0 : index
      %c0_163 = arith.constant 0 : index
      %c0_164 = arith.constant 0 : index
      %305 = vector.load %arg6[%c0_162, %c0_163, %c0_164] : memref<2x8x32xf32, #tpu.memory_space<vmem>>, vector<1x8x32xf32>
      %306 = vector.shape_cast %305 : vector<1x8x32xf32> to vector<8x32xf32>
      %c0_165 = arith.constant 0 : index
      %c0_166 = arith.constant 0 : index
      %307 = vector.load %arg12[%c0_165, %c0_166] : memref<8x32xf32, #tpu.memory_space<vmem>>, vector<8x32xf32>
      tpu.vector_store %arg12[%c0_165, %c0_166], %306 {strides = array<i32>} : memref<8x32xf32, #tpu.memory_space<vmem>>, vector<8x32xf32>,
      %c1_167 = arith.constant 1 : index
      %c0_168 = arith.constant 0 : index
      %c0_169 = arith.constant 0 : index
      %308 = vector.load %arg5[%c1_167, %c0_168, %c0_169] : memref<2x8x32xf32, #tpu.memory_space<vmem>>, vector<1x8x32xf32>
      %309 = vector.shape_cast %308 : vector<1x8x32xf32> to vector<8x32xf32>
      %c0_170 = arith.constant 0 : index
      %c0_171 = arith.constant 0 : index
      %310 = vector.load %arg13[%c0_170, %c0_171] : memref<8x32xf32, #tpu.memory_space<vmem>>, vector<8x32xf32>
      tpu.vector_store %arg13[%c0_170, %c0_171], %309 {strides = array<i32>} : memref<8x32xf32, #tpu.memory_space<vmem>>, vector<8x32xf32>,
      %c1_172 = arith.constant 1 : index
      %c0_173 = arith.constant 0 : index
      %c0_174 = arith.constant 0 : index
      %311 = vector.load %arg6[%c1_172, %c0_173, %c0_174] : memref<2x8x32xf32, #tpu.memory_space<vmem>>, vector<1x8x32xf32>
      %312 = vector.shape_cast %311 : vector<1x8x32xf32> to vector<8x32xf32>
      %c0_175 = arith.constant 0 : index
      %c0_176 = arith.constant 0 : index
      %313 = vector.load %arg14[%c0_175, %c0_176] : memref<8x32xf32, #tpu.memory_space<vmem>>, vector<8x32xf32>
      tpu.vector_store %arg14[%c0_175, %c0_176], %312 {strides = array<i32>} : memref<8x32xf32, #tpu.memory_space<vmem>>, vector<8x32xf32>,
    } else {
    }
    %c0 = arith.constant 0 : index
    %c0_1 = arith.constant 0 : index
    %c0_2 = arith.constant 0 : index
    %3 = vector.load %arg1[%c0, %c0_1, %c0_2] : memref<4x8x128xf32, #tpu.memory_space<vmem>>, vector<1x8x128xf32>
    %4 = vector.shape_cast %3 : vector<1x8x128xf32> to vector<8x128xf32>
    %c0_3 = arith.constant 0 : index
    %c0_4 = arith.constant 0 : index
    %5 = vector.load %arg11[%c0_3, %c0_4] : memref<8x32xf32, #tpu.memory_space<vmem>>, vector<8x32xf32>
    %c0_5 = arith.constant 0 : index
    %c0_6 = arith.constant 0 : index
    %6 = vector.load %arg12[%c0_5, %c0_6] : memref<8x32xf32, #tpu.memory_space<vmem>>, vector<8x32xf32>
    %c0_7 = arith.constant 0 : index
    %c0_8 = arith.constant 0 : index
    %7 = vector.load %arg3[%c0_7, %c0_8] : memref<32x128xf32, #tpu.memory_space<vmem>>, vector<32x128xf32>
    %cst = arith.constant dense<0.000000e+00> : vector<8x128xf32>
    %8 = tpu.matmul %5, %7, %cst {dimension_numbers = #tpu.dot_dimension_numbers<[1], [0], [0], [1], [0, 0, 1, 1], [], []>} : vector<8x32xf32>, vector<32x128xf32>, vector<8x128xf32> -> vector<8x128xf32>
    %9 = arith.addf %4, %8 : vector<8x128xf32>
    %10 = vector.extract_strided_slice %9 {offsets = [0, 0], sizes = [8, 32], strides = [1, 1]} : vector<8x128xf32> to vector<8x32xf32>
    %11 = arith.negf %10 : vector<8x32xf32>
    %12 = math.exp %11 : vector<8x32xf32>
    %cst_9 = arith.constant 1.000000e+00 : f32
    %13 = vector.broadcast %cst_9 : f32 to vector<8x32xf32>
    %14 = arith.addf %13, %12 : vector<8x32xf32>
    %15 = arith.divf %13, %14 : vector<8x32xf32>
    %16 = vector.extract_strided_slice %9 {offsets = [0, 32], sizes = [8, 32], strides = [1, 1]} : vector<8x128xf32> to vector<8x32xf32>
    %17 = arith.negf %16 : vector<8x32xf32>
    %18 = math.exp %17 : vector<8x32xf32>
    %cst_10 = arith.constant 1.000000e+00 : f32
    %19 = vector.broadcast %cst_10 : f32 to vector<8x32xf32>
    %20 = arith.addf %19, %18 : vector<8x32xf32>
    %21 = arith.divf %19, %20 : vector<8x32xf32>
    %22 = vector.extract_strided_slice %9 {offsets = [0, 64], sizes = [8, 32], strides = [1, 1]} : vector<8x128xf32> to vector<8x32xf32>
    %23 = math.tanh %22 : vector<8x32xf32>
    %24 = vector.extract_strided_slice %9 {offsets = [0, 96], sizes = [8, 32], strides = [1, 1]} : vector<8x128xf32> to vector<8x32xf32>
    %25 = arith.negf %24 : vector<8x32xf32>
    %26 = math.exp %25 : vector<8x32xf32>
    %cst_11 = arith.constant 1.000000e+00 : f32
    %27 = vector.broadcast %cst_11 : f32 to vector<8x32xf32>
    %28 = arith.addf %27, %26 : vector<8x32xf32>
    %29 = arith.divf %27, %28 : vector<8x32xf32>
    %30 = arith.mulf %21, %6 : vector<8x32xf32>
    %31 = arith.mulf %15, %23 : vector<8x32xf32>
    %32 = arith.addf %30, %31 : vector<8x32xf32>
    %33 = math.tanh %32 : vector<8x32xf32>
    %34 = arith.mulf %29, %33 : vector<8x32xf32>
    %c0_12 = arith.constant 0 : index
    %c0_13 = arith.constant 0 : index
    %35 = vector.load %arg11[%c0_12, %c0_13] : memref<8x32xf32, #tpu.memory_space<vmem>>, vector<8x32xf32>
    tpu.vector_store %arg11[%c0_12, %c0_13], %34 {strides = array<i32>} : memref<8x32xf32, #tpu.memory_space<vmem>>, vector<8x32xf32>,
    %c0_14 = arith.constant 0 : index
    %c0_15 = arith.constant 0 : index
    %36 = vector.load %arg12[%c0_14, %c0_15] : memref<8x32xf32, #tpu.memory_space<vmem>>, vector<8x32xf32>
    tpu.vector_store %arg12[%c0_14, %c0_15], %32 {strides = array<i32>} : memref<8x32xf32, #tpu.memory_space<vmem>>, vector<8x32xf32>,
    %c0_16 = arith.constant 0 : index
    %c0_17 = arith.constant 0 : index
    %c0_18 = arith.constant 0 : index
    %37 = vector.load %arg7[%c0_16, %c0_17, %c0_18] : memref<4x8x32xf32, #tpu.memory_space<vmem>>, vector<1x8x32xf32>
    %38 = vector.shape_cast %37 : vector<1x8x32xf32> to vector<8x32xf32>
    %39 = vector.shape_cast %34 : vector<8x32xf32> to vector<1x8x32xf32>
    tpu.vector_store %arg7[%c0_16, %c0_17, %c0_18], %39 {strides = array<i32>} : memref<4x8x32xf32, #tpu.memory_space<vmem>>, vector<1x8x32xf32>,
    %c3 = arith.constant 3 : index
    %c0_19 = arith.constant 0 : index
    %c0_20 = arith.constant 0 : index
    %40 = vector.load %arg2[%c3, %c0_19, %c0_20] : memref<4x8x128xf32, #tpu.memory_space<vmem>>, vector<1x8x128xf32>
    %41 = vector.shape_cast %40 : vector<1x8x128xf32> to vector<8x128xf32>
    %c0_21 = arith.constant 0 : index
    %c0_22 = arith.constant 0 : index
    %42 = vector.load %arg13[%c0_21, %c0_22] : memref<8x32xf32, #tpu.memory_space<vmem>>, vector<8x32xf32>
    %c0_23 = arith.constant 0 : index
    %c0_24 = arith.constant 0 : index
    %43 = vector.load %arg14[%c0_23, %c0_24] : memref<8x32xf32, #tpu.memory_space<vmem>>, vector<8x32xf32>
    %c0_25 = arith.constant 0 : index
    %c0_26 = arith.constant 0 : index
    %44 = vector.load %arg4[%c0_25, %c0_26] : memref<32x128xf32, #tpu.memory_space<vmem>>, vector<32x128xf32>
    %cst_27 = arith.constant dense<0.000000e+00> : vector<8x128xf32>
    %45 = tpu.matmul %42, %44, %cst_27 {dimension_numbers = #tpu.dot_dimension_numbers<[1], [0], [0], [1], [0, 0, 1, 1], [], []>} : vector<8x32xf32>, vector<32x128xf32>, vector<8x128xf32> -> vector<8x128xf32>
    %46 = arith.addf %41, %45 : vector<8x128xf32>
    %47 = vector.extract_strided_slice %46 {offsets = [0, 0], sizes = [8, 32], strides = [1, 1]} : vector<8x128xf32> to vector<8x32xf32>
    %48 = arith.negf %47 : vector<8x32xf32>
    %49 = math.exp %48 : vector<8x32xf32>
    %cst_28 = arith.constant 1.000000e+00 : f32
    %50 = vector.broadcast %cst_28 : f32 to vector<8x32xf32>
    %51 = arith.addf %50, %49 : vector<8x32xf32>
    %52 = arith.divf %50, %51 : vector<8x32xf32>
    %53 = vector.extract_strided_slice %46 {offsets = [0, 32], sizes = [8, 32], strides = [1, 1]} : vector<8x128xf32> to vector<8x32xf32>
    %54 = arith.negf %53 : vector<8x32xf32>
    %55 = math.exp %54 : vector<8x32xf32>
    %cst_29 = arith.constant 1.000000e+00 : f32
    %56 = vector.broadcast %cst_29 : f32 to vector<8x32xf32>
    %57 = arith.addf %56, %55 : vector<8x32xf32>
    %58 = arith.divf %56, %57 : vector<8x32xf32>
    %59 = vector.extract_strided_slice %46 {offsets = [0, 64], sizes = [8, 32], strides = [1, 1]} : vector<8x128xf32> to vector<8x32xf32>
    %60 = math.tanh %59 : vector<8x32xf32>
    %61 = vector.extract_strided_slice %46 {offsets = [0, 96], sizes = [8, 32], strides = [1, 1]} : vector<8x128xf32> to vector<8x32xf32>
    %62 = arith.negf %61 : vector<8x32xf32>
    %63 = math.exp %62 : vector<8x32xf32>
    %cst_30 = arith.constant 1.000000e+00 : f32
    %64 = vector.broadcast %cst_30 : f32 to vector<8x32xf32>
    %65 = arith.addf %64, %63 : vector<8x32xf32>
    %66 = arith.divf %64, %65 : vector<8x32xf32>
    %67 = arith.mulf %58, %43 : vector<8x32xf32>
    %68 = arith.mulf %52, %60 : vector<8x32xf32>
    %69 = arith.addf %67, %68 : vector<8x32xf32>
    %70 = math.tanh %69 : vector<8x32xf32>
    %71 = arith.mulf %66, %70 : vector<8x32xf32>
    %c0_31 = arith.constant 0 : index
    %c0_32 = arith.constant 0 : index
    %72 = vector.load %arg13[%c0_31, %c0_32] : memref<8x32xf32, #tpu.memory_space<vmem>>, vector<8x32xf32>
    tpu.vector_store %arg13[%c0_31, %c0_32], %71 {strides = array<i32>} : memref<8x32xf32, #tpu.memory_space<vmem>>, vector<8x32xf32>,
    %c0_33 = arith.constant 0 : index
    %c0_34 = arith.constant 0 : index
    %73 = vector.load %arg14[%c0_33, %c0_34] : memref<8x32xf32, #tpu.memory_space<vmem>>, vector<8x32xf32>
    tpu.vector_store %arg14[%c0_33, %c0_34], %69 {strides = array<i32>} : memref<8x32xf32, #tpu.memory_space<vmem>>, vector<8x32xf32>,
    %c3_35 = arith.constant 3 : index
    %c0_36 = arith.constant 0 : index
    %c0_37 = arith.constant 0 : index
    %74 = vector.load %arg8[%c3_35, %c0_36, %c0_37] : memref<4x8x32xf32, #tpu.memory_space<vmem>>, vector<1x8x32xf32>
    %75 = vector.shape_cast %74 : vector<1x8x32xf32> to vector<8x32xf32>
    %76 = vector.shape_cast %71 : vector<8x32xf32> to vector<1x8x32xf32>
    tpu.vector_store %arg8[%c3_35, %c0_36, %c0_37], %76 {strides = array<i32>} : memref<4x8x32xf32, #tpu.memory_space<vmem>>, vector<1x8x32xf32>,
    %c1 = arith.constant 1 : index
    %c0_38 = arith.constant 0 : index
    %c0_39 = arith.constant 0 : index
    %77 = vector.load %arg1[%c1, %c0_38, %c0_39] : memref<4x8x128xf32, #tpu.memory_space<vmem>>, vector<1x8x128xf32>
    %78 = vector.shape_cast %77 : vector<1x8x128xf32> to vector<8x128xf32>
    %c0_40 = arith.constant 0 : index
    %c0_41 = arith.constant 0 : index
    %79 = vector.load %arg11[%c0_40, %c0_41] : memref<8x32xf32, #tpu.memory_space<vmem>>, vector<8x32xf32>
    %c0_42 = arith.constant 0 : index
    %c0_43 = arith.constant 0 : index
    %80 = vector.load %arg12[%c0_42, %c0_43] : memref<8x32xf32, #tpu.memory_space<vmem>>, vector<8x32xf32>
    %c0_44 = arith.constant 0 : index
    %c0_45 = arith.constant 0 : index
    %81 = vector.load %arg3[%c0_44, %c0_45] : memref<32x128xf32, #tpu.memory_space<vmem>>, vector<32x128xf32>
    %cst_46 = arith.constant dense<0.000000e+00> : vector<8x128xf32>
    %82 = tpu.matmul %79, %81, %cst_46 {dimension_numbers = #tpu.dot_dimension_numbers<[1], [0], [0], [1], [0, 0, 1, 1], [], []>} : vector<8x32xf32>, vector<32x128xf32>, vector<8x128xf32> -> vector<8x128xf32>
    %83 = arith.addf %78, %82 : vector<8x128xf32>
    %84 = vector.extract_strided_slice %83 {offsets = [0, 0], sizes = [8, 32], strides = [1, 1]} : vector<8x128xf32> to vector<8x32xf32>
    %85 = arith.negf %84 : vector<8x32xf32>
    %86 = math.exp %85 : vector<8x32xf32>
    %cst_47 = arith.constant 1.000000e+00 : f32
    %87 = vector.broadcast %cst_47 : f32 to vector<8x32xf32>
    %88 = arith.addf %87, %86 : vector<8x32xf32>
    %89 = arith.divf %87, %88 : vector<8x32xf32>
    %90 = vector.extract_strided_slice %83 {offsets = [0, 32], sizes = [8, 32], strides = [1, 1]} : vector<8x128xf32> to vector<8x32xf32>
    %91 = arith.negf %90 : vector<8x32xf32>
    %92 = math.exp %91 : vector<8x32xf32>
    %cst_48 = arith.constant 1.000000e+00 : f32
    %93 = vector.broadcast %cst_48 : f32 to vector<8x32xf32>
    %94 = arith.addf %93, %92 : vector<8x32xf32>
    %95 = arith.divf %93, %94 : vector<8x32xf32>
    %96 = vector.extract_strided_slice %83 {offsets = [0, 64], sizes = [8, 32], strides = [1, 1]} : vector<8x128xf32> to vector<8x32xf32>
    %97 = math.tanh %96 : vector<8x32xf32>
    %98 = vector.extract_strided_slice %83 {offsets = [0, 96], sizes = [8, 32], strides = [1, 1]} : vector<8x128xf32> to vector<8x32xf32>
    %99 = arith.negf %98 : vector<8x32xf32>
    %100 = math.exp %99 : vector<8x32xf32>
    %cst_49 = arith.constant 1.000000e+00 : f32
    %101 = vector.broadcast %cst_49 : f32 to vector<8x32xf32>
    %102 = arith.addf %101, %100 : vector<8x32xf32>
    %103 = arith.divf %101, %102 : vector<8x32xf32>
    %104 = arith.mulf %95, %80 : vector<8x32xf32>
    %105 = arith.mulf %89, %97 : vector<8x32xf32>
    %106 = arith.addf %104, %105 : vector<8x32xf32>
    %107 = math.tanh %106 : vector<8x32xf32>
    %108 = arith.mulf %103, %107 : vector<8x32xf32>
    %c0_50 = arith.constant 0 : index
    %c0_51 = arith.constant 0 : index
    %109 = vector.load %arg11[%c0_50, %c0_51] : memref<8x32xf32, #tpu.memory_space<vmem>>, vector<8x32xf32>
    tpu.vector_store %arg11[%c0_50, %c0_51], %108 {strides = array<i32>} : memref<8x32xf32, #tpu.memory_space<vmem>>, vector<8x32xf32>,
    %c0_52 = arith.constant 0 : index
    %c0_53 = arith.constant 0 : index
    %110 = vector.load %arg12[%c0_52, %c0_53] : memref<8x32xf32, #tpu.memory_space<vmem>>, vector<8x32xf32>
    tpu.vector_store %arg12[%c0_52, %c0_53], %106 {strides = array<i32>} : memref<8x32xf32, #tpu.memory_space<vmem>>, vector<8x32xf32>,
    %c1_54 = arith.constant 1 : index
    %c0_55 = arith.constant 0 : index
    %c0_56 = arith.constant 0 : index
    %111 = vector.load %arg7[%c1_54, %c0_55, %c0_56] : memref<4x8x32xf32, #tpu.memory_space<vmem>>, vector<1x8x32xf32>
    %112 = vector.shape_cast %111 : vector<1x8x32xf32> to vector<8x32xf32>
    %113 = vector.shape_cast %108 : vector<8x32xf32> to vector<1x8x32xf32>
    tpu.vector_store %arg7[%c1_54, %c0_55, %c0_56], %113 {strides = array<i32>} : memref<4x8x32xf32, #tpu.memory_space<vmem>>, vector<1x8x32xf32>,
    %c2 = arith.constant 2 : index
    %c0_57 = arith.constant 0 : index
    %c0_58 = arith.constant 0 : index
    %114 = vector.load %arg2[%c2, %c0_57, %c0_58] : memref<4x8x128xf32, #tpu.memory_space<vmem>>, vector<1x8x128xf32>
    %115 = vector.shape_cast %114 : vector<1x8x128xf32> to vector<8x128xf32>
    %c0_59 = arith.constant 0 : index
    %c0_60 = arith.constant 0 : index
    %116 = vector.load %arg13[%c0_59, %c0_60] : memref<8x32xf32, #tpu.memory_space<vmem>>, vector<8x32xf32>
    %c0_61 = arith.constant 0 : index
    %c0_62 = arith.constant 0 : index
    %117 = vector.load %arg14[%c0_61, %c0_62] : memref<8x32xf32, #tpu.memory_space<vmem>>, vector<8x32xf32>
    %c0_63 = arith.constant 0 : index
    %c0_64 = arith.constant 0 : index
    %118 = vector.load %arg4[%c0_63, %c0_64] : memref<32x128xf32, #tpu.memory_space<vmem>>, vector<32x128xf32>
    %cst_65 = arith.constant dense<0.000000e+00> : vector<8x128xf32>
    %119 = tpu.matmul %116, %118, %cst_65 {dimension_numbers = #tpu.dot_dimension_numbers<[1], [0], [0], [1], [0, 0, 1, 1], [], []>} : vector<8x32xf32>, vector<32x128xf32>, vector<8x128xf32> -> vector<8x128xf32>
    %120 = arith.addf %115, %119 : vector<8x128xf32>
    %121 = vector.extract_strided_slice %120 {offsets = [0, 0], sizes = [8, 32], strides = [1, 1]} : vector<8x128xf32> to vector<8x32xf32>
    %122 = arith.negf %121 : vector<8x32xf32>
    %123 = math.exp %122 : vector<8x32xf32>
    %cst_66 = arith.constant 1.000000e+00 : f32
    %124 = vector.broadcast %cst_66 : f32 to vector<8x32xf32>
    %125 = arith.addf %124, %123 : vector<8x32xf32>
    %126 = arith.divf %124, %125 : vector<8x32xf32>
    %127 = vector.extract_strided_slice %120 {offsets = [0, 32], sizes = [8, 32], strides = [1, 1]} : vector<8x128xf32> to vector<8x32xf32>
    %128 = arith.negf %127 : vector<8x32xf32>
    %129 = math.exp %128 : vector<8x32xf32>
    %cst_67 = arith.constant 1.000000e+00 : f32
    %130 = vector.broadcast %cst_67 : f32 to vector<8x32xf32>
    %131 = arith.addf %130, %129 : vector<8x32xf32>
    %132 = arith.divf %130, %131 : vector<8x32xf32>
    %133 = vector.extract_strided_slice %120 {offsets = [0, 64], sizes = [8, 32], strides = [1, 1]} : vector<8x128xf32> to vector<8x32xf32>
    %134 = math.tanh %133 : vector<8x32xf32>
    %135 = vector.extract_strided_slice %120 {offsets = [0, 96], sizes = [8, 32], strides = [1, 1]} : vector<8x128xf32> to vector<8x32xf32>
    %136 = arith.negf %135 : vector<8x32xf32>
    %137 = math.exp %136 : vector<8x32xf32>
    %cst_68 = arith.constant 1.000000e+00 : f32
    %138 = vector.broadcast %cst_68 : f32 to vector<8x32xf32>
    %139 = arith.addf %138, %137 : vector<8x32xf32>
    %140 = arith.divf %138, %139 : vector<8x32xf32>
    %141 = arith.mulf %132, %117 : vector<8x32xf32>
    %142 = arith.mulf %126, %134 : vector<8x32xf32>
    %143 = arith.addf %141, %142 : vector<8x32xf32>
    %144 = math.tanh %143 : vector<8x32xf32>
    %145 = arith.mulf %140, %144 : vector<8x32xf32>
    %c0_69 = arith.constant 0 : index
    %c0_70 = arith.constant 0 : index
    %146 = vector.load %arg13[%c0_69, %c0_70] : memref<8x32xf32, #tpu.memory_space<vmem>>, vector<8x32xf32>
    tpu.vector_store %arg13[%c0_69, %c0_70], %145 {strides = array<i32>} : memref<8x32xf32, #tpu.memory_space<vmem>>, vector<8x32xf32>,
    %c0_71 = arith.constant 0 : index
    %c0_72 = arith.constant 0 : index
    %147 = vector.load %arg14[%c0_71, %c0_72] : memref<8x32xf32, #tpu.memory_space<vmem>>, vector<8x32xf32>
    tpu.vector_store %arg14[%c0_71, %c0_72], %143 {strides = array<i32>} : memref<8x32xf32, #tpu.memory_space<vmem>>, vector<8x32xf32>,
    %c2_73 = arith.constant 2 : index
    %c0_74 = arith.constant 0 : index
    %c0_75 = arith.constant 0 : index
    %148 = vector.load %arg8[%c2_73, %c0_74, %c0_75] : memref<4x8x32xf32, #tpu.memory_space<vmem>>, vector<1x8x32xf32>
    %149 = vector.shape_cast %148 : vector<1x8x32xf32> to vector<8x32xf32>
    %150 = vector.shape_cast %145 : vector<8x32xf32> to vector<1x8x32xf32>
    tpu.vector_store %arg8[%c2_73, %c0_74, %c0_75], %150 {strides = array<i32>} : memref<4x8x32xf32, #tpu.memory_space<vmem>>, vector<1x8x32xf32>,
    %c2_76 = arith.constant 2 : index
    %c0_77 = arith.constant 0 : index
    %c0_78 = arith.constant 0 : index
    %151 = vector.load %arg1[%c2_76, %c0_77, %c0_78] : memref<4x8x128xf32, #tpu.memory_space<vmem>>, vector<1x8x128xf32>
    %152 = vector.shape_cast %151 : vector<1x8x128xf32> to vector<8x128xf32>
    %c0_79 = arith.constant 0 : index
    %c0_80 = arith.constant 0 : index
    %153 = vector.load %arg11[%c0_79, %c0_80] : memref<8x32xf32, #tpu.memory_space<vmem>>, vector<8x32xf32>
    %c0_81 = arith.constant 0 : index
    %c0_82 = arith.constant 0 : index
    %154 = vector.load %arg12[%c0_81, %c0_82] : memref<8x32xf32, #tpu.memory_space<vmem>>, vector<8x32xf32>
    %c0_83 = arith.constant 0 : index
    %c0_84 = arith.constant 0 : index
    %155 = vector.load %arg3[%c0_83, %c0_84] : memref<32x128xf32, #tpu.memory_space<vmem>>, vector<32x128xf32>
    %cst_85 = arith.constant dense<0.000000e+00> : vector<8x128xf32>
    %156 = tpu.matmul %153, %155, %cst_85 {dimension_numbers = #tpu.dot_dimension_numbers<[1], [0], [0], [1], [0, 0, 1, 1], [], []>} : vector<8x32xf32>, vector<32x128xf32>, vector<8x128xf32> -> vector<8x128xf32>
    %157 = arith.addf %152, %156 : vector<8x128xf32>
    %158 = vector.extract_strided_slice %157 {offsets = [0, 0], sizes = [8, 32], strides = [1, 1]} : vector<8x128xf32> to vector<8x32xf32>
    %159 = arith.negf %158 : vector<8x32xf32>
    %160 = math.exp %159 : vector<8x32xf32>
    %cst_86 = arith.constant 1.000000e+00 : f32
    %161 = vector.broadcast %cst_86 : f32 to vector<8x32xf32>
    %162 = arith.addf %161, %160 : vector<8x32xf32>
    %163 = arith.divf %161, %162 : vector<8x32xf32>
    %164 = vector.extract_strided_slice %157 {offsets = [0, 32], sizes = [8, 32], strides = [1, 1]} : vector<8x128xf32> to vector<8x32xf32>
    %165 = arith.negf %164 : vector<8x32xf32>
    %166 = math.exp %165 : vector<8x32xf32>
    %cst_87 = arith.constant 1.000000e+00 : f32
    %167 = vector.broadcast %cst_87 : f32 to vector<8x32xf32>
    %168 = arith.addf %167, %166 : vector<8x32xf32>
    %169 = arith.divf %167, %168 : vector<8x32xf32>
    %170 = vector.extract_strided_slice %157 {offsets = [0, 64], sizes = [8, 32], strides = [1, 1]} : vector<8x128xf32> to vector<8x32xf32>
    %171 = math.tanh %170 : vector<8x32xf32>
    %172 = vector.extract_strided_slice %157 {offsets = [0, 96], sizes = [8, 32], strides = [1, 1]} : vector<8x128xf32> to vector<8x32xf32>
    %173 = arith.negf %172 : vector<8x32xf32>
    %174 = math.exp %173 : vector<8x32xf32>
    %cst_88 = arith.constant 1.000000e+00 : f32
    %175 = vector.broadcast %cst_88 : f32 to vector<8x32xf32>
    %176 = arith.addf %175, %174 : vector<8x32xf32>
    %177 = arith.divf %175, %176 : vector<8x32xf32>
    %178 = arith.mulf %169, %154 : vector<8x32xf32>
    %179 = arith.mulf %163, %171 : vector<8x32xf32>
    %180 = arith.addf %178, %179 : vector<8x32xf32>
    %181 = math.tanh %180 : vector<8x32xf32>
    %182 = arith.mulf %177, %181 : vector<8x32xf32>
    %c0_89 = arith.constant 0 : index
    %c0_90 = arith.constant 0 : index
    %183 = vector.load %arg11[%c0_89, %c0_90] : memref<8x32xf32, #tpu.memory_space<vmem>>, vector<8x32xf32>
    tpu.vector_store %arg11[%c0_89, %c0_90], %182 {strides = array<i32>} : memref<8x32xf32, #tpu.memory_space<vmem>>, vector<8x32xf32>,
    %c0_91 = arith.constant 0 : index
    %c0_92 = arith.constant 0 : index
    %184 = vector.load %arg12[%c0_91, %c0_92] : memref<8x32xf32, #tpu.memory_space<vmem>>, vector<8x32xf32>
    tpu.vector_store %arg12[%c0_91, %c0_92], %180 {strides = array<i32>} : memref<8x32xf32, #tpu.memory_space<vmem>>, vector<8x32xf32>,
    %c2_93 = arith.constant 2 : index
    %c0_94 = arith.constant 0 : index
    %c0_95 = arith.constant 0 : index
    %185 = vector.load %arg7[%c2_93, %c0_94, %c0_95] : memref<4x8x32xf32, #tpu.memory_space<vmem>>, vector<1x8x32xf32>
    %186 = vector.shape_cast %185 : vector<1x8x32xf32> to vector<8x32xf32>
    %187 = vector.shape_cast %182 : vector<8x32xf32> to vector<1x8x32xf32>
    tpu.vector_store %arg7[%c2_93, %c0_94, %c0_95], %187 {strides = array<i32>} : memref<4x8x32xf32, #tpu.memory_space<vmem>>, vector<1x8x32xf32>,
    %c1_96 = arith.constant 1 : index
    %c0_97 = arith.constant 0 : index
    %c0_98 = arith.constant 0 : index
    %188 = vector.load %arg2[%c1_96, %c0_97, %c0_98] : memref<4x8x128xf32, #tpu.memory_space<vmem>>, vector<1x8x128xf32>
    %189 = vector.shape_cast %188 : vector<1x8x128xf32> to vector<8x128xf32>
    %c0_99 = arith.constant 0 : index
    %c0_100 = arith.constant 0 : index
    %190 = vector.load %arg13[%c0_99, %c0_100] : memref<8x32xf32, #tpu.memory_space<vmem>>, vector<8x32xf32>
    %c0_101 = arith.constant 0 : index
    %c0_102 = arith.constant 0 : index
    %191 = vector.load %arg14[%c0_101, %c0_102] : memref<8x32xf32, #tpu.memory_space<vmem>>, vector<8x32xf32>
    %c0_103 = arith.constant 0 : index
    %c0_104 = arith.constant 0 : index
    %192 = vector.load %arg4[%c0_103, %c0_104] : memref<32x128xf32, #tpu.memory_space<vmem>>, vector<32x128xf32>
    %cst_105 = arith.constant dense<0.000000e+00> : vector<8x128xf32>
    %193 = tpu.matmul %190, %192, %cst_105 {dimension_numbers = #tpu.dot_dimension_numbers<[1], [0], [0], [1], [0, 0, 1, 1], [], []>} : vector<8x32xf32>, vector<32x128xf32>, vector<8x128xf32> -> vector<8x128xf32>
    %194 = arith.addf %189, %193 : vector<8x128xf32>
    %195 = vector.extract_strided_slice %194 {offsets = [0, 0], sizes = [8, 32], strides = [1, 1]} : vector<8x128xf32> to vector<8x32xf32>
    %196 = arith.negf %195 : vector<8x32xf32>
    %197 = math.exp %196 : vector<8x32xf32>
    %cst_106 = arith.constant 1.000000e+00 : f32
    %198 = vector.broadcast %cst_106 : f32 to vector<8x32xf32>
    %199 = arith.addf %198, %197 : vector<8x32xf32>
    %200 = arith.divf %198, %199 : vector<8x32xf32>
    %201 = vector.extract_strided_slice %194 {offsets = [0, 32], sizes = [8, 32], strides = [1, 1]} : vector<8x128xf32> to vector<8x32xf32>
    %202 = arith.negf %201 : vector<8x32xf32>
    %203 = math.exp %202 : vector<8x32xf32>
    %cst_107 = arith.constant 1.000000e+00 : f32
    %204 = vector.broadcast %cst_107 : f32 to vector<8x32xf32>
    %205 = arith.addf %204, %203 : vector<8x32xf32>
    %206 = arith.divf %204, %205 : vector<8x32xf32>
    %207 = vector.extract_strided_slice %194 {offsets = [0, 64], sizes = [8, 32], strides = [1, 1]} : vector<8x128xf32> to vector<8x32xf32>
    %208 = math.tanh %207 : vector<8x32xf32>
    %209 = vector.extract_strided_slice %194 {offsets = [0, 96], sizes = [8, 32], strides = [1, 1]} : vector<8x128xf32> to vector<8x32xf32>
    %210 = arith.negf %209 : vector<8x32xf32>
    %211 = math.exp %210 : vector<8x32xf32>
    %cst_108 = arith.constant 1.000000e+00 : f32
    %212 = vector.broadcast %cst_108 : f32 to vector<8x32xf32>
    %213 = arith.addf %212, %211 : vector<8x32xf32>
    %214 = arith.divf %212, %213 : vector<8x32xf32>
    %215 = arith.mulf %206, %191 : vector<8x32xf32>
    %216 = arith.mulf %200, %208 : vector<8x32xf32>
    %217 = arith.addf %215, %216 : vector<8x32xf32>
    %218 = math.tanh %217 : vector<8x32xf32>
    %219 = arith.mulf %214, %218 : vector<8x32xf32>
    %c0_109 = arith.constant 0 : index
    %c0_110 = arith.constant 0 : index
    %220 = vector.load %arg13[%c0_109, %c0_110] : memref<8x32xf32, #tpu.memory_space<vmem>>, vector<8x32xf32>
    tpu.vector_store %arg13[%c0_109, %c0_110], %219 {strides = array<i32>} : memref<8x32xf32, #tpu.memory_space<vmem>>, vector<8x32xf32>,
    %c0_111 = arith.constant 0 : index
    %c0_112 = arith.constant 0 : index
    %221 = vector.load %arg14[%c0_111, %c0_112] : memref<8x32xf32, #tpu.memory_space<vmem>>, vector<8x32xf32>
    tpu.vector_store %arg14[%c0_111, %c0_112], %217 {strides = array<i32>} : memref<8x32xf32, #tpu.memory_space<vmem>>, vector<8x32xf32>,
    %c1_113 = arith.constant 1 : index
    %c0_114 = arith.constant 0 : index
    %c0_115 = arith.constant 0 : index
    %222 = vector.load %arg8[%c1_113, %c0_114, %c0_115] : memref<4x8x32xf32, #tpu.memory_space<vmem>>, vector<1x8x32xf32>
    %223 = vector.shape_cast %222 : vector<1x8x32xf32> to vector<8x32xf32>
    %224 = vector.shape_cast %219 : vector<8x32xf32> to vector<1x8x32xf32>
    tpu.vector_store %arg8[%c1_113, %c0_114, %c0_115], %224 {strides = array<i32>} : memref<4x8x32xf32, #tpu.memory_space<vmem>>, vector<1x8x32xf32>,
    %c3_116 = arith.constant 3 : index
    %c0_117 = arith.constant 0 : index
    %c0_118 = arith.constant 0 : index
    %225 = vector.load %arg1[%c3_116, %c0_117, %c0_118] : memref<4x8x128xf32, #tpu.memory_space<vmem>>, vector<1x8x128xf32>
    %226 = vector.shape_cast %225 : vector<1x8x128xf32> to vector<8x128xf32>
    %c0_119 = arith.constant 0 : index
    %c0_120 = arith.constant 0 : index
    %227 = vector.load %arg11[%c0_119, %c0_120] : memref<8x32xf32, #tpu.memory_space<vmem>>, vector<8x32xf32>
    %c0_121 = arith.constant 0 : index
    %c0_122 = arith.constant 0 : index
    %228 = vector.load %arg12[%c0_121, %c0_122] : memref<8x32xf32, #tpu.memory_space<vmem>>, vector<8x32xf32>
    %c0_123 = arith.constant 0 : index
    %c0_124 = arith.constant 0 : index
    %229 = vector.load %arg3[%c0_123, %c0_124] : memref<32x128xf32, #tpu.memory_space<vmem>>, vector<32x128xf32>
    %cst_125 = arith.constant dense<0.000000e+00> : vector<8x128xf32>
    %230 = tpu.matmul %227, %229, %cst_125 {dimension_numbers = #tpu.dot_dimension_numbers<[1], [0], [0], [1], [0, 0, 1, 1], [], []>} : vector<8x32xf32>, vector<32x128xf32>, vector<8x128xf32> -> vector<8x128xf32>
    %231 = arith.addf %226, %230 : vector<8x128xf32>
    %232 = vector.extract_strided_slice %231 {offsets = [0, 0], sizes = [8, 32], strides = [1, 1]} : vector<8x128xf32> to vector<8x32xf32>
    %233 = arith.negf %232 : vector<8x32xf32>
    %234 = math.exp %233 : vector<8x32xf32>
    %cst_126 = arith.constant 1.000000e+00 : f32
    %235 = vector.broadcast %cst_126 : f32 to vector<8x32xf32>
    %236 = arith.addf %235, %234 : vector<8x32xf32>
    %237 = arith.divf %235, %236 : vector<8x32xf32>
    %238 = vector.extract_strided_slice %231 {offsets = [0, 32], sizes = [8, 32], strides = [1, 1]} : vector<8x128xf32> to vector<8x32xf32>
    %239 = arith.negf %238 : vector<8x32xf32>
    %240 = math.exp %239 : vector<8x32xf32>
    %cst_127 = arith.constant 1.000000e+00 : f32
    %241 = vector.broadcast %cst_127 : f32 to vector<8x32xf32>
    %242 = arith.addf %241, %240 : vector<8x32xf32>
    %243 = arith.divf %241, %242 : vector<8x32xf32>
    %244 = vector.extract_strided_slice %231 {offsets = [0, 64], sizes = [8, 32], strides = [1, 1]} : vector<8x128xf32> to vector<8x32xf32>
    %245 = math.tanh %244 : vector<8x32xf32>
    %246 = vector.extract_strided_slice %231 {offsets = [0, 96], sizes = [8, 32], strides = [1, 1]} : vector<8x128xf32> to vector<8x32xf32>
    %247 = arith.negf %246 : vector<8x32xf32>
    %248 = math.exp %247 : vector<8x32xf32>
    %cst_128 = arith.constant 1.000000e+00 : f32
    %249 = vector.broadcast %cst_128 : f32 to vector<8x32xf32>
    %250 = arith.addf %249, %248 : vector<8x32xf32>
    %251 = arith.divf %249, %250 : vector<8x32xf32>
    %252 = arith.mulf %243, %228 : vector<8x32xf32>
    %253 = arith.mulf %237, %245 : vector<8x32xf32>
    %254 = arith.addf %252, %253 : vector<8x32xf32>
    %255 = math.tanh %254 : vector<8x32xf32>
    %256 = arith.mulf %251, %255 : vector<8x32xf32>
    %c0_129 = arith.constant 0 : index
    %c0_130 = arith.constant 0 : index
    %257 = vector.load %arg11[%c0_129, %c0_130] : memref<8x32xf32, #tpu.memory_space<vmem>>, vector<8x32xf32>
    tpu.vector_store %arg11[%c0_129, %c0_130], %256 {strides = array<i32>} : memref<8x32xf32, #tpu.memory_space<vmem>>, vector<8x32xf32>,
    %c0_131 = arith.constant 0 : index
    %c0_132 = arith.constant 0 : index
    %258 = vector.load %arg12[%c0_131, %c0_132] : memref<8x32xf32, #tpu.memory_space<vmem>>, vector<8x32xf32>
    tpu.vector_store %arg12[%c0_131, %c0_132], %254 {strides = array<i32>} : memref<8x32xf32, #tpu.memory_space<vmem>>, vector<8x32xf32>,
    %c3_133 = arith.constant 3 : index
    %c0_134 = arith.constant 0 : index
    %c0_135 = arith.constant 0 : index
    %259 = vector.load %arg7[%c3_133, %c0_134, %c0_135] : memref<4x8x32xf32, #tpu.memory_space<vmem>>, vector<1x8x32xf32>
    %260 = vector.shape_cast %259 : vector<1x8x32xf32> to vector<8x32xf32>
    %261 = vector.shape_cast %256 : vector<8x32xf32> to vector<1x8x32xf32>
    tpu.vector_store %arg7[%c3_133, %c0_134, %c0_135], %261 {strides = array<i32>} : memref<4x8x32xf32, #tpu.memory_space<vmem>>, vector<1x8x32xf32>,
    %c0_136 = arith.constant 0 : index
    %c0_137 = arith.constant 0 : index
    %c0_138 = arith.constant 0 : index
    %262 = vector.load %arg2[%c0_136, %c0_137, %c0_138] : memref<4x8x128xf32, #tpu.memory_space<vmem>>, vector<1x8x128xf32>
    %263 = vector.shape_cast %262 : vector<1x8x128xf32> to vector<8x128xf32>
    %c0_139 = arith.constant 0 : index
    %c0_140 = arith.constant 0 : index
    %264 = vector.load %arg13[%c0_139, %c0_140] : memref<8x32xf32, #tpu.memory_space<vmem>>, vector<8x32xf32>
    %c0_141 = arith.constant 0 : index
    %c0_142 = arith.constant 0 : index
    %265 = vector.load %arg14[%c0_141, %c0_142] : memref<8x32xf32, #tpu.memory_space<vmem>>, vector<8x32xf32>
    %c0_143 = arith.constant 0 : index
    %c0_144 = arith.constant 0 : index
    %266 = vector.load %arg4[%c0_143, %c0_144] : memref<32x128xf32, #tpu.memory_space<vmem>>, vector<32x128xf32>
    %cst_145 = arith.constant dense<0.000000e+00> : vector<8x128xf32>
    %267 = tpu.matmul %264, %266, %cst_145 {dimension_numbers = #tpu.dot_dimension_numbers<[1], [0], [0], [1], [0, 0, 1, 1], [], []>} : vector<8x32xf32>, vector<32x128xf32>, vector<8x128xf32> -> vector<8x128xf32>
    %268 = arith.addf %263, %267 : vector<8x128xf32>
    %269 = vector.extract_strided_slice %268 {offsets = [0, 0], sizes = [8, 32], strides = [1, 1]} : vector<8x128xf32> to vector<8x32xf32>
    %270 = arith.negf %269 : vector<8x32xf32>
    %271 = math.exp %270 : vector<8x32xf32>
    %cst_146 = arith.constant 1.000000e+00 : f32
    %272 = vector.broadcast %cst_146 : f32 to vector<8x32xf32>
    %273 = arith.addf %272, %271 : vector<8x32xf32>
    %274 = arith.divf %272, %273 : vector<8x32xf32>
    %275 = vector.extract_strided_slice %268 {offsets = [0, 32], sizes = [8, 32], strides = [1, 1]} : vector<8x128xf32> to vector<8x32xf32>
    %276 = arith.negf %275 : vector<8x32xf32>
    %277 = math.exp %276 : vector<8x32xf32>
    %cst_147 = arith.constant 1.000000e+00 : f32
    %278 = vector.broadcast %cst_147 : f32 to vector<8x32xf32>
    %279 = arith.addf %278, %277 : vector<8x32xf32>
    %280 = arith.divf %278, %279 : vector<8x32xf32>
    %281 = vector.extract_strided_slice %268 {offsets = [0, 64], sizes = [8, 32], strides = [1, 1]} : vector<8x128xf32> to vector<8x32xf32>
    %282 = math.tanh %281 : vector<8x32xf32>
    %283 = vector.extract_strided_slice %268 {offsets = [0, 96], sizes = [8, 32], strides = [1, 1]} : vector<8x128xf32> to vector<8x32xf32>
    %284 = arith.negf %283 : vector<8x32xf32>
    %285 = math.exp %284 : vector<8x32xf32>
    %cst_148 = arith.constant 1.000000e+00 : f32
    %286 = vector.broadcast %cst_148 : f32 to vector<8x32xf32>
    %287 = arith.addf %286, %285 : vector<8x32xf32>
    %288 = arith.divf %286, %287 : vector<8x32xf32>
    %289 = arith.mulf %280, %265 : vector<8x32xf32>
    %290 = arith.mulf %274, %282 : vector<8x32xf32>
    %291 = arith.addf %289, %290 : vector<8x32xf32>
    %292 = math.tanh %291 : vector<8x32xf32>
    %293 = arith.mulf %288, %292 : vector<8x32xf32>
    %c0_149 = arith.constant 0 : index
    %c0_150 = arith.constant 0 : index
    %294 = vector.load %arg13[%c0_149, %c0_150] : memref<8x32xf32, #tpu.memory_space<vmem>>, vector<8x32xf32>
    tpu.vector_store %arg13[%c0_149, %c0_150], %293 {strides = array<i32>} : memref<8x32xf32, #tpu.memory_space<vmem>>, vector<8x32xf32>,
    %c0_151 = arith.constant 0 : index
    %c0_152 = arith.constant 0 : index
    %295 = vector.load %arg14[%c0_151, %c0_152] : memref<8x32xf32, #tpu.memory_space<vmem>>, vector<8x32xf32>
    tpu.vector_store %arg14[%c0_151, %c0_152], %291 {strides = array<i32>} : memref<8x32xf32, #tpu.memory_space<vmem>>, vector<8x32xf32>,
    %c0_153 = arith.constant 0 : index
    %c0_154 = arith.constant 0 : index
    %c0_155 = arith.constant 0 : index
    %296 = vector.load %arg8[%c0_153, %c0_154, %c0_155] : memref<4x8x32xf32, #tpu.memory_space<vmem>>, vector<1x8x32xf32>
    %297 = vector.shape_cast %296 : vector<1x8x32xf32> to vector<8x32xf32>
    %298 = vector.shape_cast %293 : vector<8x32xf32> to vector<1x8x32xf32>
    tpu.vector_store %arg8[%c0_153, %c0_154, %c0_155], %298 {strides = array<i32>} : memref<4x8x32xf32, #tpu.memory_space<vmem>>, vector<1x8x32xf32>,
    %c3_i32 = arith.constant 3 : i32
    %299 = arith.cmpi eq, %arg0, %c3_i32 : i32
    %300 = arith.extui %299 : i1 to i32
    %c0_i32_156 = arith.constant 0 : i32
    %301 = arith.cmpi ne, %300, %c0_i32_156 : i32
    scf.if %301 {
      %c0_157 = arith.constant 0 : index
      %c0_158 = arith.constant 0 : index
      %302 = vector.load %arg11[%c0_157, %c0_158] : memref<8x32xf32, #tpu.memory_space<vmem>>, vector<8x32xf32>
      %c0_159 = arith.constant 0 : index
      %c0_160 = arith.constant 0 : index
      %c0_161 = arith.constant 0 : index
      %303 = vector.load %arg9[%c0_159, %c0_160, %c0_161] : memref<2x8x32xf32, #tpu.memory_space<vmem>>, vector<1x8x32xf32>
      %304 = vector.shape_cast %303 : vector<1x8x32xf32> to vector<8x32xf32>
      %305 = vector.shape_cast %302 : vector<8x32xf32> to vector<1x8x32xf32>
      tpu.vector_store %arg9[%c0_159, %c0_160, %c0_161], %305 {strides = array<i32>} : memref<2x8x32xf32, #tpu.memory_space<vmem>>, vector<1x8x32xf32>,
      %c0_162 = arith.constant 0 : index
      %c0_163 = arith.constant 0 : index
      %306 = vector.load %arg13[%c0_162, %c0_163] : memref<8x32xf32, #tpu.memory_space<vmem>>, vector<8x32xf32>
      %c1_164 = arith.constant 1 : index
      %c0_165 = arith.constant 0 : index
      %c0_166 = arith.constant 0 : index
      %307 = vector.load %arg9[%c1_164, %c0_165, %c0_166] : memref<2x8x32xf32, #tpu.memory_space<vmem>>, vector<1x8x32xf32>
      %308 = vector.shape_cast %307 : vector<1x8x32xf32> to vector<8x32xf32>
      %309 = vector.shape_cast %306 : vector<8x32xf32> to vector<1x8x32xf32>
      tpu.vector_store %arg9[%c1_164, %c0_165, %c0_166], %309 {strides = array<i32>} : memref<2x8x32xf32, #tpu.memory_space<vmem>>, vector<1x8x32xf32>,
      %c0_167 = arith.constant 0 : index
      %c0_168 = arith.constant 0 : index
      %310 = vector.load %arg12[%c0_167, %c0_168] : memref<8x32xf32, #tpu.memory_space<vmem>>, vector<8x32xf32>
      %c0_169 = arith.constant 0 : index
      %c0_170 = arith.constant 0 : index
      %c0_171 = arith.constant 0 : index
      %311 = vector.load %arg10[%c0_169, %c0_170, %c0_171] : memref<2x8x32xf32, #tpu.memory_space<vmem>>, vector<1x8x32xf32>
      %312 = vector.shape_cast %311 : vector<1x8x32xf32> to vector<8x32xf32>
      %313 = vector.shape_cast %310 : vector<8x32xf32> to vector<1x8x32xf32>
      tpu.vector_store %arg10[%c0_169, %c0_170, %c0_171], %313 {strides = array<i32>} : memref<2x8x32xf32, #tpu.memory_space<vmem>>, vector<1x8x32xf32>,
      %c0_172 = arith.constant 0 : index
      %c0_173 = arith.constant 0 : index
      %314 = vector.load %arg14[%c0_172, %c0_173] : memref<8x32xf32, #tpu.memory_space<vmem>>, vector<8x32xf32>
      %c1_174 = arith.constant 1 : index
      %c0_175 = arith.constant 0 : index
      %c0_176 = arith.constant 0 : index
      %315 = vector.load %arg10[%c1_174, %c0_175, %c0_176] : memref<2x8x32xf32, #tpu.memory_space<vmem>>, vector<1x8x32xf32>
      %316 = vector.shape_cast %315 : vector<1x8x32xf32> to vector<8x32xf32>
      %317 = vector.shape_cast %314 : vector<8x32xf32> to vector<1x8x32xf32>
      tpu.vector_store %arg10[%c1_174, %c0_175, %c0_176], %317 {strides = array<i32>} : memref<2x8x32xf32, #tpu.memory_space<vmem>>, vector<1x8x32xf32>,
    } else {
    }
    return
  }
  func.func @transform_0(%arg0: i32) -> (i32, i32, i32) {
    %c0_i32 = arith.constant 0 : i32
    %c0_i32_0 = arith.constant 0 : i32
    %c0_i32_1 = arith.constant 0 : i32
    return %arg0, %c0_i32, %c0_i32_0 : i32, i32, i32
  }
  func.func @transform_1(%arg0: i32) -> (i32, i32, i32) {
    %c3_i32 = arith.constant 3 : i32
    %0 = arith.subi %c3_i32, %arg0 : i32
    %c0_i32 = arith.constant 0 : i32
    %c0_i32_0 = arith.constant 0 : i32
    %c0_i32_1 = arith.constant 0 : i32
    return %0, %c0_i32, %c0_i32_0 : i32, i32, i32
  }
  func.func @transform_2(%arg0: i32) -> (i32, i32) {
    %c0_i32 = arith.constant 0 : i32
    %c0_i32_0 = arith.constant 0 : i32
    %c0_i32_1 = arith.constant 0 : i32
    return %c0_i32, %c0_i32_0 : i32, i32
  }
  func.func @transform_3(%arg0: i32) -> (i32, i32) {
    %c0_i32 = arith.constant 0 : i32
    %c0_i32_0 = arith.constant 0 : i32
    %c0_i32_1 = arith.constant 0 : i32
    return %c0_i32, %c0_i32_0 : i32, i32
  }
  func.func @transform_4(%arg0: i32) -> (i32, i32, i32) {
    %c0_i32 = arith.constant 0 : i32
    %c0_i32_0 = arith.constant 0 : i32
    %c0_i32_1 = arith.constant 0 : i32
    %c0_i32_2 = arith.constant 0 : i32
    return %c0_i32, %c0_i32_0, %c0_i32_1 : i32, i32, i32
  }
  func.func @transform_5(%arg0: i32) -> (i32, i32, i32) {
    %c0_i32 = arith.constant 0 : i32
    %c0_i32_0 = arith.constant 0 : i32
    %c0_i32_1 = arith.constant 0 : i32
    %c0_i32_2 = arith.constant 0 : i32
    return %c0_i32, %c0_i32_0, %c0_i32_1 : i32, i32, i32
  }
  func.func @transform_6(%arg0: i32) -> (i32, i32, i32) {
    %c0_i32 = arith.constant 0 : i32
    %c0_i32_0 = arith.constant 0 : i32
    %c0_i32_1 = arith.constant 0 : i32
    return %arg0, %c0_i32, %c0_i32_0 : i32, i32, i32
  }
  func.func @transform_7(%arg0: i32) -> (i32, i32, i32) {
    %c3_i32 = arith.constant 3 : i32
    %0 = arith.subi %c3_i32, %arg0 : i32
    %c0_i32 = arith.constant 0 : i32
    %c0_i32_0 = arith.constant 0 : i32
    %c0_i32_1 = arith.constant 0 : i32
    return %0, %c0_i32, %c0_i32_0 : i32, i32, i32
  }
  func.func @transform_8(%arg0: i32) -> (i32, i32, i32) {
    %c0_i32 = arith.constant 0 : i32
    %c0_i32_0 = arith.constant 0 : i32
    %c0_i32_1 = arith.constant 0 : i32
    %c0_i32_2 = arith.constant 0 : i32
    return %c0_i32, %c0_i32_0, %c0_i32_1 : i32, i32, i32
  }
  func.func @transform_9(%arg0: i32) -> (i32, i32, i32) {
    %c0_i32 = arith.constant 0 : i32
    %c0_i32_0 = arith.constant 0 : i32
    %c0_i32_1 = arith.constant 0 : i32
    %c0_i32_2 = arith.constant 0 : i32
    return %c0_i32, %c0_i32_0, %c0_i32_1 : i32, i32, i32
  }
}

</mosaic_0001>

<bundles_post_ra>
// kernel: tpu_custom_call.1
= control target key start
LH: loop header
LB: loop body
LE: loop exit
PB: predicated region body
PF: predicated region fallthrough
CT: control target
= control target key end

     0   :  { %s3159_s0 = inlined_call_operand.hbm [shape: f32[16,8,128], index: 0, kind: input, shape index: {}]   ;;  %s3160_s1 = inlined_call_operand.hbm [shape: f32[16,8,128], index: 1, kind: input, shape index: {}]   ;;  %s3161_s2 = inlined_call_operand.hbm [shape: f32[32,128], index: 2, kind: input, shape index: {}]   ;;  %s3162_s3 = inlined_call_operand.hbm [shape: f32[32,128], index: 3, kind: input, shape index: {}]   ;;  %s3163_s4 = inlined_call_operand.hbm [shape: f32[2,8,32], index: 4, kind: input, shape index: {}]   ;;  %s3164_s5 = inlined_call_operand.hbm [shape: f32[2,8,32], index: 5, kind: input, shape index: {}]   ;;  %s3165_s6 = inlined_call_operand.hbm [shape: f32[16,8,32], index: 6, kind: output, shape index: {0}]   ;;  %s3166_s7 = inlined_call_operand.hbm [shape: f32[16,8,32], index: 7, kind: output, shape index: {1}]   ;;  %s3167_s8 = inlined_call_operand.hbm [shape: f32[2,8,32], index: 8, kind: output, shape index: {2}]   ;;  %s3168_s9 = inlined_call_operand.hbm [shape: f32[2,8,32], index: 9, kind: output, shape index: {3}]  }
   0x1   :  { %3188 = sst [smem:[#allocation38_spill]] %s3159_s0 }
   0x2   :  { %3189 = sst [smem:[#allocation39_spill]] %s3161_s2 }
   0x3   :  { %3190 = sst [smem:[#allocation40_spill]] %s3162_s3 }
   0x4   :  { %3191 = sst [smem:[#allocation41_spill]] %s3163_s4 }
   0x5   :  { %3192 = sst [smem:[#allocation42_spill]] %s3164_s5 }
   0x6   :  { %15 = vsyncpa [#allocation7], 0 }
   0x7   :  { %17 = vsyncpa [#allocation7 + $0x1], 0 }
   0x8   :  { %18 = vsyncpa [#allocation10], 0 }
   0x9   :  { %20 = vsyncpa [#allocation10 + $0x1], 0 }
   0xa   :  { %21 = vsyncpa [#allocation13], 0 }
   0xb   :  { %22 = vsyncpa [#allocation16], 0 }
   0xc   :  { %23 = vsyncpa [#allocation8], 0 }
   0xd   :  { %25 = vsyncpa [#allocation8 + $0x1], 0 }
   0xe   :  { %26 = vsyncpa [#allocation19], 0 }
   0xf   :  { %28 = vsyncpa [#allocation19 + $0x1], 0 }
  0x10   :  { %29 = vsyncpa [#allocation22], 0  ;;  %s2542_s30 = smov 0   ;;  %s2544_s10 = smov 0  }
  0x11   :  { %s2546_s11 = smov 0   ;;  %s2548_s12 = smov 0  }
  0x12   :  { %s2550_s13 = smov 0   ;;  %s2552_s14 = smov 0  }
  0x13   :  { %s2554_s15 = smov 0  }
  0x14 LB: > { %3193 = sst [smem:[#allocation32_spill]] %s2459_s12  ;;  %s2578_s16 = sadd.s32 4294967295, %s2471_s15   ;;  %s2471_s15 = sphi %s2554_s15, %s3255_s15   ;;  %s2467_s14 = sphi %s2552_s14, %s3249_s14   ;;  %s2463_s13 = sphi %s2550_s13, %s3254_s13   ;;  %s2459_s12 = sphi %s2548_s12, %s3253_s12   ;;  %s2455_s11 = sphi %s2546_s11, %s3252_s11   ;;  %s2451_s10 = sphi %s2544_s10, %s3251_s10   ;;  %s2447_s30 = sphi %s2542_s30, %s3250_s30  }
  0x15   : > { %3194 = sst [smem:[#allocation33_spill]] %s2467_s14  ;;  %p3169_p0 = scmp.ne.s32.totalorder %s2451_s10, %s2447_s30 }
  0x16   : > { %p3176_p1 = scmp.eq.s32.totalorder %s2578_s16, 0  ;;  %p3170_p2 = scmp.eq.s32.totalorder %s2578_s16, 3 }
  0x17   : > { %p1718_p3 = scmp.ge.s32.totalorder %s2471_s15, 1  ;;  %p274_p4 = scmp.lt.s32.totalorder %s2471_s15, 5 }
  0x18   : > { %p2591_p5 = por %p3169_p0, %p3176_p1  ;;  %s2473_s19 = smov [#allocation11]  }
  0x19   : > { %p2596_p7 = pnand %p1718_p3, %p274_p4  ;;  %s286_s20 = sshll.u32 %s2473_s19, 4  ;;  %s287_s20 = int_to_ptr.vmem [resolvable:$true] %s286_s20 }
  0x1a   : > { %s3195_s17 = scalar_select %p2591_p5, 1, 0 }
  0x1b   : > { %s3196_s18 = scalar_select %p2596_p7, 1, 0 }
  0x1c   : > { %p1945_p8 = pneg %p2596_p7  ;;  %s2474_s22 = smov [#allocation12]  }
  0x1d   : > { %s299_s23 = sshll.u32 %s2474_s22, 4  ;;  %s2132_s24 = scalar_lea.vmem %s287_s20, 512  ;;  %s300_s23 = int_to_ptr.vmem [resolvable:$true] %s299_s23 }
  0x1e   : > { %p2604_p9 = pnand %p1945_p8, %p3176_p1  ;;  %p2133_p11 = scmp.ne.s32.totalorder %s287_s20, %s2132_s24 }
  0x1f   : > { %p2140_p3 = scmp.lt.s32.totalorder %s287_s20, %s287_s20  ;;  %p2141_p4 = scmp.lt.s32.totalorder %s2132_s24, %s2132_s24 }
  0x20   : > { %p2123_p10 = pneg %p2604_p9 }
  0x21   : > { %p2142_p6 = por %p2141_p4, %p2140_p3 }
  0x22   : > { %p2135_p12 = pnand %p2133_p11, %p2123_p10 }
  0x24   : > { %p2136_p13 = pneg %p2135_p12 }
  0x26   : > { %p2143_p8 = pnand %p2142_p6, %p2136_p13 }
  0x28   : > { %2146 = shalt.err (!%p2143_p8)
}
  0x29   : > { %s3172_s25 = smov 128   ;;  %s3174_s26 = smov 8  }
  0x2a   : > { %s3198_s2 = sld [smem:[#allocation39_spill]]  ;;  %s2158_s29 = scalar_lea.vmem %s300_s23, 512 }
  0x2b   : > { %p2159_p11 = scmp.ne.s32.totalorder %s300_s23, %s2158_s29  ;;  %p2166_p6 = scmp.lt.s32.totalorder %s300_s23, %s300_s23 }
  0x2c   : > { %p2167_p13 = scmp.lt.s32.totalorder %s2158_s29, %s2158_s29 }
  0x2d   : > { %p2161_p12 = pnand %p2159_p11, %p2123_p10 }
  0x2e   : > { %p2168_p4 = por %p2167_p13, %p2166_p6 }
  0x2f   : > { %p2162_p3 = pneg %p2161_p12 }
  0x30   : > { %1948 = dma.hbm_to_vmem [thread:$0]  (!%p2604_p9), %s3198_s2, 512, %s287_s20, [#allocation10], %s3172_s25, %s3172_s25, %s3174_s26  }
  0x31   : > { %p2169_p8 = pnand %p2168_p4, %p2162_p3 }
  0x33   : > { %2172 = shalt.err (!%p2169_p8)
}
  0x34   : > { %s3199_s3 = sld [smem:[#allocation40_spill]]  ;;  %s2477_s20 = smov [#allocation14]  }
  0x35   : > { %s312_s24 = sshll.u32 %s2477_s20, 4  ;;  %s2478_s27 = smov [#allocation15]   ;;  %s313_s24 = int_to_ptr.vmem [resolvable:$true] %s312_s24 }
  0x36   : > { %s325_s28 = sshll.u32 %s2478_s27, 4  ;;  %s2184_s2 = scalar_lea.vmem %s313_s24, 256  ;;  %s326_s28 = int_to_ptr.vmem [resolvable:$true] %s325_s28 }
  0x37   : > { %p2185_p11 = scmp.ne.s32.totalorder %s313_s24, %s2184_s2  ;;  %p2192_p6 = scmp.lt.s32.totalorder %s313_s24, %s313_s24 }
  0x38   : > { %p2193_p13 = scmp.lt.s32.totalorder %s2184_s2, %s2184_s2 }
  0x39   : > { %p2187_p12 = pnand %p2185_p11, %p2123_p10 }
  0x3a   : > { %1951 = dma.hbm_to_vmem [thread:$0]  (!%p2604_p9), %s3199_s3, 512, %s300_s23, [#allocation13], %s3172_s25, %s3172_s25, %s3174_s26  }
  0x3b   : > { %p2188_p3 = pneg %p2187_p12  ;;  %p2194_p4 = por %p2193_p13, %p2192_p6 }
  0x3d   : > { %p2195_p8 = pnand %p2194_p4, %p2188_p3 }
  0x3f   : > { %2198 = shalt.err (!%p2195_p8)
}
  0x40   : > { %s3200_s4 = sld [smem:[#allocation41_spill]]  ;;  %s2210_s19 = scalar_lea.vmem %s326_s28, 256 }
  0x41   : > { %p2211_p0 = scmp.ne.s32.totalorder %s326_s28, %s2210_s19  ;;  %p2218_p6 = scmp.lt.s32.totalorder %s326_s28, %s326_s28 }
  0x42   : > { %p2219_p3 = scmp.lt.s32.totalorder %s2210_s19, %s2210_s19 }
  0x43   : > { %p2213_p11 = pnand %p2211_p0, %p2123_p10 }
  0x44   : > { %p2220_p13 = por %p2219_p3, %p2218_p6 }
  0x45   : > { %p2214_p12 = pneg %p2213_p11 }
  0x46   : > { %1954 = dma.hbm_to_vmem [thread:$0]  (!%p2604_p9), %s3200_s4, 256, %s313_s24, [#allocation13], %s3172_s25, %s3172_s25, %s3174_s26  }
  0x47   : > { %p2221_p4 = pnand %p2220_p13, %p2214_p12 }
  0x49   : > { %2224 = shalt.err (!%p2221_p4)
}
  0x4a   : > { %s3201_s5 = sld [smem:[#allocation42_spill]]  ;;  %s3171_s21 = sadd.s32 4294967294, %s2471_s15  }
  0x4b   : > { %p49_p0 = scmp.ne.s32.totalorder %s2467_s14, %s2463_s13  ;;  %p3178_p10 = scmp.eq.s32.totalorder %s2471_s15, 0 }
  0x4c   : > { %p55_p8 = scmp.ne.s32.totalorder %s2463_s13, %s2459_s12  ;;  %p197_p12 = scmp.eq.s32.totalorder %s3171_s21, 3 }
  0x4d   : > { %p2663_p11 = por %p3170_p2, %p49_p0  ;;  %p51_p6 = por %p3178_p10, %p49_p0 }
  0x4e   : > { %p2673_p3 = por %p3176_p1, %p55_p8  ;;  %p3206_p13 = scmp.ne.s32.totalorder %s2451_s10, %s2447_s30 }
  0x4f   : > { %s3202_s24 = scalar_select %p2663_p11, 1, 0 }
  0x50   : > { %1957 = dma.hbm_to_vmem [thread:$0]  (!%p2604_p9), %s3201_s5, 256, %s326_s28, [#allocation16], %s3172_s25, %s3172_s25, %s3174_s26  }
  0x51   : > { %s3203_s27 = scalar_select %p2673_p3, 1, 0 }
  0x52   : > { %p2677_p9 = por %p197_p12, %p55_p8  ;;  %p2684_p4 = por %p197_p12, %p3206_p13 }
  0x53   : > { %p3177_p2 = scmp.lt.s32.totalorder %s2471_s15, 4  ;;  %s339_s29 = sand.u32 1, %s2467_s14  }
  0x54   : > { %s3204_s28 = scalar_select %p2677_p9, 1, 0 }
  0x55   : > { %s3207_s23 = scalar_select %p2684_p4, 1, 0 }
  0x56   : > { %3205 = sst [smem:[#allocation34_spill]] %s3204_s28  ;;  %s1724_s19 = sshll.u32 %s339_s29, 5 }
  0x57   : > { %3208 = sst [smem:[#allocation35_spill]] %s3207_s23  ;;  %s1781_s2 = sshll.u32 %s2471_s15, 9 }
  0x58   : > { %s3209_s0 = sld [smem:[#allocation38_spill]]  ;;  %s343_s25 = scalar_lea.vmem [#allocation6], %s1724_s19 }
  0x59   : > { %s350_s26 = sshll.u32 %s343_s25, 4  ;;  %p2700_p0 = pnand %p3177_p2, %p51_p6  ;;  %s2696_s26 = int_to_ptr.vmem [resolvable:$true] %s350_s26 }
  0x5a   : > { %s2705_s3 = sadd.s32 1, %s2471_s15   ;;  %s2707_s4 = scalar_lea.sflag [#allocation7], %s339_s29 }
  0x5b   : > { %p2227_p12 = pneg %p2700_p0 }
  0x5e   : > { %s2694_s20 = scalar_lea.hbm %s3209_s0, %s1781_s2  ;;  %s2230_s2 = scalar_lea.hbm %s3209_s0, 2048 }
  0x5f   : > { %s2225_s21 = scalar_lea.hbm %s2694_s20, 512  ;;  %p2231_p6 = scmp.lt.s32.totalorder %s2694_s20, %s3209_s0 }
  0x60   : > { %p2226_p8 = scmp.ne.s32.totalorder %s2694_s20, %s2225_s21  ;;  %p2232_p2 = scmp.lt.s32.totalorder %s2230_s2, %s2225_s21 }
  0x62   : > { %p2228_p13 = pnand %p2227_p12, %p2226_p8  ;;  %p2233_p10 = por %p2232_p2, %p2231_p6 }
  0x64   : > { %p2229_p1 = pneg %p2228_p13 }
  0x66   : > { %p2234_p4 = pnand %p2233_p10, %p2229_p1 }
  0x68   : > { %2237 = shalt.err (!%p2234_p4)
}
  0x69   : > { %s2238_s29 = scalar_lea.vmem %s2696_s26, 512  ;;  %s2479_s23 = smov [#allocation6]  }
  0x6a   : > { %p2239_p9 = scmp.ne.s32.totalorder %s2696_s26, %s2238_s29  ;;  %s2243_s28 = sshll.u32 %s2479_s23, 4  ;;  %s2244_s28 = int_to_ptr.vmem [resolvable:$false] %s2243_s28 }
  0x6b   : > { %s2245_s19 = scalar_lea.vmem %s2244_s28, 1024  ;;  %p2246_p13 = scmp.lt.s32.totalorder %s2696_s26, %s2244_s28 }
  0x6c   : > { %p2241_p11 = pnand %p2239_p9, %p2227_p12  ;;  %p2247_p5 = scmp.lt.s32.totalorder %s2245_s19, %s2238_s29 }
  0x6e   : > { %p2242_p8 = pneg %p2241_p11  ;;  %p2248_p3 = por %p2247_p5, %p2246_p13 }
  0x70   : > { %p2249_p7 = pnand %p2248_p3, %p2242_p8 }
  0x72   : > { %2252 = shalt.err (!%p2249_p7)
}
  0x73   : > { %s3211_s5 = smov 8   ;;  %s3212_s21 = smov 128  }
  0x74   : > { %1961 = dma.hbm_to_vmem [thread:$0]  (!%p2700_p0), %s2694_s20, 512, %s2696_s26, %s2707_s4, %s3212_s21, %s3212_s21, %s3211_s5  }
  0x75   : > { %s39_s28 = ssub.s32 %s2471_s15, %s2705_s3  ;;  %s65_s23 = ssub.s32 3, %s2471_s15 }
  0x76   : > { %p40_p1 = scmp.eq.s32.totalorder %s39_s28, 0  ;;  %s66_s30 = ssub.s32 3, %s2705_s3 }
  0x77   : > { %s67_s25 = ssub.s32 %s65_s23, %s66_s30  ;;  %s70_s2 = sadd.s32 1, %s2455_s11 }
  0x78   : > { %s3213_s22 = sadd.s32 1, %s2467_s14  ;;  %p68_p2 = scmp.eq.s32.totalorder %s67_s25, 0 }
  0x79   : > { %s2739_s29 = scalar_select %p40_p1, %s2467_s14, %s3213_s22  }
  0x7a   : > { %p77_p5 = scmp.ne.s32.totalorder %s2455_s11, %s2451_s10  ;;  %s360_s19 = sand.u32 1, %s2471_s15  }
  0x7b   : > { %3214 = sst [smem:[#allocation36_spill]] %s2739_s29  ;;  %s362_s0 = sand.u32 1, %s2455_s11  }
  0x7c   : > { %s2746_s12 = scalar_select %p68_p2, %s2455_s11, %s70_s2  }
  0x7d   : > { %p3216_p7 = scmp.eq.s32.totalorder %s2471_s15, 0  ;;  %p3217_p11 = scmp.eq.s32.totalorder %s2578_s16, 3 }
  0x7e   : > { %3215 = sst [smem:[#allocation37_spill]] %s2746_s12  ;;  %s1727_s26 = sshll.u32 %s362_s0, 5 }
  0x7f   : > { %p79_p10 = por %p77_p5, %p3216_p7  ;;  %p2752_p3 = por %p3217_p11, %p77_p5 }
  0x80   : > { %s1782_s20 = sshll.u32 %s65_s23, 9  ;;  %s364_s25 = scalar_lea.vmem [#allocation9], %s1727_s26 }
  0x81   : > { %s3218_s4 = scalar_select %p2752_p3, 1, 0 }
  0x82   : > { %s2759_s22 = scalar_lea.hbm %s3160_s1, %s1782_s20  ;;  %s372_s2 = sshll.u32 %s364_s25, 4  ;;  %s2761_s2 = int_to_ptr.vmem [resolvable:$true] %s372_s2 }
  0x83   : > { %p3219_p9 = scmp.lt.s32.totalorder %s2471_s15, 4  ;;  %s2769_s0 = scalar_lea.sflag [#allocation10], %s360_s19 }
  0x84   : > { %s2253_s23 = scalar_lea.hbm %s2759_s22, 512  ;;  %s2258_s26 = scalar_lea.hbm %s3160_s1, 2048 }
  0x85   : > { %p2765_p4 = pnand %p3219_p9, %p79_p10  ;;  %p2254_p0 = scmp.ne.s32.totalorder %s2759_s22, %s2253_s23 }
  0x86   : > { %p2259_p13 = scmp.lt.s32.totalorder %s2759_s22, %s3160_s1  ;;  %p2260_p1 = scmp.lt.s32.totalorder %s2258_s26, %s2253_s23 }
  0x87   : > { %p2255_p12 = pneg %p2765_p4 }
  0x88   : > { %p2261_p2 = por %p2260_p1, %p2259_p13 }
  0x89   : > { %p2256_p6 = pnand %p2255_p12, %p2254_p0 }
  0x8b   : > { %p2257_p8 = pneg %p2256_p6 }
  0x8d   : > { %p2262_p5 = pnand %p2261_p2, %p2257_p8 }
  0x8f   : > { %2265 = shalt.err (!%p2262_p5)
}
  0x90   : > { %s2266_s19 = scalar_lea.vmem %s2761_s2, 512  ;;  %s2480_s14 = smov [#allocation9]  }
  0x91   : > { %p2267_p7 = scmp.ne.s32.totalorder %s2761_s2, %s2266_s19  ;;  %s2271_s12 = sshll.u32 %s2480_s14, 4  ;;  %s2272_s12 = int_to_ptr.vmem [resolvable:$false] %s2271_s12 }
  0x92   : > { %s2273_s20 = scalar_lea.vmem %s2272_s12, 1024  ;;  %p2274_p9 = scmp.lt.s32.totalorder %s2761_s2, %s2272_s12 }
  0x93   : > { %p2269_p10 = pnand %p2267_p7, %p2255_p12  ;;  %p2275_p0 = scmp.lt.s32.totalorder %s2273_s20, %s2266_s19 }
  0x95   : > { %p2270_p11 = pneg %p2269_p10  ;;  %p2276_p6 = por %p2275_p0, %p2274_p9 }
  0x97   : > { %p2277_p3 = pnand %p2276_p6, %p2270_p11 }
  0x99   : > { %2280 = shalt.err (!%p2277_p3)
}
  0x9a   : > { %1964 = dma.hbm_to_vmem [thread:$0]  (!%p2765_p4), %s2759_s22, 512, %s2761_s2, %s2769_s0, %s3212_s21, %s3212_s21, %s3211_s5  }
  0x9b   : > { %p3221_p12 = scmp.ne.s32.totalorder %s3196_s18, 0 }
  0x9c   : > { %s2796_s14 = sand.u32 (!%p3221_p12), 1, %s2463_s13   ;;  %p3222_p3 = scmp.ne.s32.totalorder (!%p3221_p12), %s3203_s27, 0 }
  0x9d   : > { %384 = sbr.rel (%p3221_p12) target bundleno = 3072 (0xc00), region = 44  ;;  %s1731_s12 = sshll.u32 (!%p3221_p12), %s2796_s14, 5 }
  0x9e   : > { %s387_s23 = scalar_lea.sflag (!%p3221_p12), [#allocation7], %s2796_s14  ;;  %s2800_s28 = scalar_lea.vmem (!%p3221_p12), [#allocation6], %s1731_s12 }
  0xa2   : > { %2410 = dma.done.wait (%p3222_p3), %s387_s23, 512  }
  0xa3   : > { %2412 = vsyncadd (%p3222_p3), %s387_s23, 4294966784  ;;  %s395_s18 = sand.u32 1, %s2578_s16   ;;  %s397_s5 = sand.u32 1, %s2451_s10  }
  0xa4   : > { %s1732_s21 = sshll.u32 %s397_s5, 5  ;;  %s396_s29 = scalar_lea.sflag [#allocation10], %s395_s18 }
  0xa5   : > { %s2810_s22 = scalar_lea.vmem [#allocation9], %s1732_s21  ;;  %p3223_p4 = scmp.ne.s32.totalorder %s3195_s17, 0 }
  0xa7   : > { %2414 = dma.done.wait (%p3223_p4), %s396_s29, 512  }
  0xa8   : > { %2416 = vsyncadd (%p3223_p4), %s396_s29, 4294966784  ;;  %p3224_p8 = scmp.eq.s32.totalorder %s2578_s16, 0 }
  0xaa   : > { %2418 = dma.done.wait (%p3224_p8), [#allocation10], 512   ;;  %p3225_p13 = pmov %p3224_p8 }
  0xab   : > { %p3226_p1 = pmov %p3224_p8 }
  0xac   : > { %2420 = vsyncadd (%p3225_p13), [#allocation10], 4294966784 }
  0xad   : > { %2422 = dma.done.wait (%p3226_p1), [#allocation13], 768   ;;  %p3227_p2 = pmov %p3226_p1 }
  0xae   : > { %p3228_p5 = pmov %p3226_p1 }
  0xaf   : > { %2424 = vsyncadd (%p3227_p2), [#allocation13], 4294966528 }
  0xb0   : > { %2426 = dma.done.wait (%p3228_p5), [#allocation16], 256   ;;  %p3229_p7 = pmov %p3226_p1 }
  0xb1   : > { %s2828_s17 = scalar_lea.vmem [#allocation17], %s1731_s12  ;;  %s2830_s27 = scalar_lea.vmem [#allocation18], %s1732_s21 }
  0xb2   : > { %2428 = vsyncadd (%p3229_p7), [#allocation16], 4294967040  ;;  %p3230_p10 = scmp.ne.s32.totalorder %s2578_s16, 0 }
  0xb4   : > { %469 = sbr.rel (%p3230_p10) target bundleno = 188 (0xbc), region = 72 }
  0xb9   : > { %v470_v0 = vld [vmem:[#allocation14] sm:$0xff]  ;;  %vm471_vm0 = vcmask 261120   ;;  %v473_v1 = vld [vmem:[#allocation15] sm:$0xff]  ;;  %v476_v2 = vld [vmem:[#allocation14 + $0x8] sm:$0xff] }
  0xba   : > { %472 = vst.msk [vmem:[#allocation2] sm:$0xff] %vm471_vm0, %v470_v0  ;;  %474 = vst.msk [vmem:[#allocation3] sm:$0xff] %vm471_vm0, %v473_v1  ;;  %v479_v3 = vld [vmem:[#allocation15 + $0x8] sm:$0xff] }
  0xbb   : > { %477 = vst.msk [vmem:[#allocation4] sm:$0xff] %vm471_vm0, %v476_v2  ;;  %480 = vst.msk [vmem:[#allocation5] sm:$0xff] %vm471_vm0, %v479_v3 }
  0xbc PF: > { %v2834_v4 = vld [vmem:[#allocation11 + $0x18] sm:$0xff]  ;;  %v2481_v6 = vmov 0.0   ;;  %v2840_v7 = vld [vmem:[#allocation11 + $0x10] sm:$0xff]  ;;  %v2848_v9 = vld [vmem:[#allocation11 + $0x8] sm:$0xff]  ;;  %vm2482_vm1 = vmmov 0   ;;  %vm488_vm2 = vcmask 261120  }
  0xbd   : > { %v2836_v5 = vld [vmem:[#allocation12 + $0x18] sm:$0xff]  ;;  %1825 = vmatprep.subr.mxu0 %v2481_v6  ;;  %1836 = vmatprep.subr.mxu1 %v2481_v6  ;;  %v2842_v8 = vld [vmem:[#allocation12 + $0x10] sm:$0xff]  ;;  %v2852_v10 = vld [vmem:[#allocation12 + $0x8] sm:$0xff]  ;;  %s2483_s2 = smov 32   ;;  %s2484_s0 = smov 64  }
  0xbe   : > { %1826 = vmatpush3.msra.mxu0 %v2834_v4  ;;  %1837 = vmatpush3.msra.mxu1 %v2836_v5  ;;  %v2856_v11 = vld [vmem:[#allocation11] sm:$0xff]  ;;  %v1742_v19 = vld [vmem:[%s2810_s22 + $0x18] sm:$0xff]  ;;  %s2485_s26 = smov 96   ;;  %v1746_v59 = vld [vmem:[%s2800_s28 + $0x8] sm:$0xff]  ;;  %p1768_p11 = scmp.ne.s32.totalorder %s2578_s16, 3 }
  0xbf   : > { %1827 = vmatprep.subr.mxu0 %v2481_v6  ;;  %1838 = vmatprep.subr.mxu1 %v2481_v6  ;;  %v2861_v13 = vld [vmem:[#allocation12] sm:$0xff]  ;;  %v1750_v63 = vld [vmem:[%s2810_s22 + $0x10] sm:$0xff] }
  0xc0   : > { %1828 = vmatpush3.msra.mxu0 %v2840_v7  ;;  %1839 = vmatpush3.msra.mxu1 %v2842_v8  ;;  %v481_v17 = vld [vmem:[%s2800_s28] sm:$0xff] }
  0xc1   : > { %1829 = vmatprep.subr.mxu0 %v2481_v6  ;;  %1840 = vmatprep.subr.mxu1 %v2481_v6  ;;  %v482_v12 = vld [vmem:[#allocation2] sm:$0xff]  ;;  %v483_v14 = vld [vmem:[#allocation3] sm:$0xff] }
  0xc2   : > { %1830 = vmatpush3.msra.mxu0 %v2848_v9  ;;  %1833 = vmatprep.mubr.msk.f32.mxu0 %vm2482_vm1, %v2481_v6  ;;  %v604_v15 = vld [vmem:[#allocation4] sm:$0xff]  ;;  %v605_v16 = vld [vmem:[#allocation5] sm:$0xff] }
  0xc3   : > { %1831 = vmatprep.subr.mxu0 %v2481_v6  ;;  %1841 = vmatpush3.msra.mxu1 %v2852_v10 }
  0xc4   : > { %1832 = vmatpush3.msra.mxu0 %v2856_v11  ;;  %1842 = vmatprep.subr.mxu1 %v2481_v6 }
  0xc5   : > { %1834 = vmatmul.mubr.msk.f32.vlgmr.msra.gmra.mxu0 %vm488_vm2, %v482_v12  ;;  %1843 = vmatpush3.msra.mxu1 %v2861_v13 }
  0xc6   : > { %1844 = vmatprep.mubr.msk.f32.mxu1 %vm2482_vm1, %v2481_v6  ;;  %571 = vrot.lane.b32.xlu1 %v483_v14, %s2483_s2 }
  0xc7   : > { %1845 = vmatmul.mubr.msk.f32.vlgmr.msra.gmra.mxu1 %vm488_vm2, %v604_v15  ;;  %1847 = vmatprep.subr.mxu0 %v2481_v6 }
  0xc8   : > { %1848 = vmatpush3.msra.mxu0 %v2834_v4  ;;  %1858 = vmatprep.subr.mxu1 %v2481_v6 }
  0xc9   : > { %1849 = vmatprep.subr.mxu0 %v2481_v6  ;;  %1859 = vmatpush3.msra.mxu1 %v2836_v5 }
  0xca   : > { %692 = vrot.lane.b32.xlu1 %v605_v16, %s2483_s2  ;;  %1850 = vmatpush3.msra.mxu0 %v2840_v7 }
  0xcb   : > { %1851 = vmatprep.subr.mxu0 %v2481_v6  ;;  %1860 = vmatprep.subr.mxu1 %v2481_v6 }
  0xcc   : > { %1852 = vmatpush3.msra.mxu0 %v2848_v9  ;;  %1855 = vmatprep.mubr.msk.f32.mxu0 %vm2482_vm1, %v2481_v6 }
  0xcd   : > { %1853 = vmatprep.subr.mxu0 %v2481_v6  ;;  %1861 = vmatpush3.msra.mxu1 %v2842_v8 }
  0xce   : > { %1854 = vmatpush3.msra.mxu0 %v2856_v11  ;;  %1862 = vmatprep.subr.mxu1 %v2481_v6 }
  0xcf   : > { %1863 = vmatpush3.msra.mxu1 %v2852_v10  ;;  %1866 = vmatprep.mubr.msk.f32.mxu1 %vm2482_vm1, %v2481_v6 }
  0xd0   : > { %1864 = vmatprep.subr.mxu1 %v2481_v6  ;;  %1869 = vmatprep.subr.mxu0 %v2481_v6 }
  0xd1   : > { %1865 = vmatpush3.msra.mxu1 %v2861_v13 }
  0xd2   : > { %1880 = vmatprep.subr.mxu1 %v2481_v6 }
 0x138   : > { %v572_v39 = vpop.permute.xlu1 %571 }
 0x13c   : > { %v693_v41 = vpop.permute.xlu1 %692 }
 0x185   : > { %v558_v18 = vpop.f32.mrf.mxu0 }
 0x186   : > { %v562_v20 = vadd.f32 %v558_v18, %v481_v17 }
 0x187   : > { %v1835_v21 = vpop.f32.mrf.mxu0  ;;  %v679_v22 = vpop.f32.mrf.mxu1 }
 0x188   : > { %2057 = vtanh.f32 %v562_v20  ;;  %v683_v23 = vadd.f32 %v1742_v19, %v679_v22  ;;  %v1741_v27 = vmul.f32 -1.442695, %v562_v20 }
 0x189   : > { %v1846_v24 = vpop.f32.mrf.mxu1 }
 0x18a   : > { %2059 = vtanh.f32 %v683_v23  ;;  %v1744_v28 = vmul.f32 -1.442695, %v683_v23 }
 0x18b   : > { %2061 = vpow2.f32 %v1741_v27 }
 0x18c   : > { %2063 = vpow2.f32 %v1744_v28 }
 0x195   : > { %v2058_v25 = vpop.eup %2057 }
 0x196   : > { %576 = vrot.lane.b32.xlu0 %v2058_v25, %s2484_s0 }
 0x197   : > { %v2060_v26 = vpop.eup %2059 }
 0x198   : > { %v2062_v29 = vpop.eup %2061 }
 0x199   : > { %v566_v30 = vadd.f32 1.0, %v2062_v29  ;;  %v2064_v31 = vpop.eup %2063 }
 0x19a   : > { %697 = vrot.lane.b32.xlu0 %v2060_v26, %s2484_s0  ;;  %v687_v32 = vadd.f32 1.0, %v2064_v31 }
 0x19b   : > { %2065 = vrcp.f32 %v566_v30 }
 0x19c   : > { %2067 = vrcp.f32 %v687_v32 }
 0x1a8   : > { %v2066_v33 = vpop.eup %2065 }
 0x1a9   : > { %v2068_v36 = vpop.eup %2067  ;;  %v574_v40 = vmul.f32 %v2066_v33, %v572_v39 }
 0x1aa   : > { %v695_v44 = vmul.f32 %v2068_v36, %v693_v41 }
 0x208   : > { %v577_v34 = vpop.permute.xlu0 %576 }
 0x209   : > { %v579_v35 = vmul.f32 %v2066_v33, %v577_v34 }
 0x20b   : > { %581 = vrot.lane.b32.xlu0 %v579_v35, %s2483_s2 }
 0x20c   : > { %v698_v37 = vpop.permute.xlu0 %697 }
 0x20d   : > { %v700_v38 = vmul.f32 %v2068_v36, %v698_v37 }
 0x20f   : > { %702 = vrot.lane.b32.xlu1 %v700_v38, %s2483_s2 }
 0x27d   : > { %v582_v42 = vpop.permute.xlu0 %581 }
 0x27e   : > { %v584_v43 = vadd.f32 %v582_v42, %v574_v40 }
 0x280   : > { %2069 = vtanh.f32 %v584_v43 }
 0x281   : > { %v703_v45 = vpop.permute.xlu1 %702 }
 0x282   : > { %v705_v46 = vadd.f32 %v703_v45, %v695_v44 }
 0x284   : > { %2071 = vtanh.f32 %v705_v46 }
 0x28d   : > { %v2070_v47 = vpop.eup %2069 }
 0x28e   : > { %587 = vrot.lane.b32.xlu0 %v2070_v47, %s2484_s0 }
 0x291   : > { %v2072_v48 = vpop.eup %2071 }
 0x292   : > { %708 = vrot.lane.b32.xlu1 %v2072_v48, %s2484_s0  ;;  %v1758_v48 = vld [vmem:[%s2810_s22 + $0x8] sm:$0xff] }
 0x300   : > { %v588_v49 = vpop.permute.xlu0 %587 }
 0x301   : > { %v590_v50 = vmul.f32 %v2066_v33, %v588_v49 }
 0x303   : > { %592 = vrot.lane.b32.xlu0 %v590_v50, %s2483_s2 }
 0x304   : > { %v709_v51 = vpop.permute.xlu1 %708 }
 0x305   : > { %v711_v52 = vmul.f32 %v2068_v36, %v709_v51 }
 0x307   : > { %713 = vrot.lane.b32.xlu1 %v711_v52, %s2483_s2  ;;  %597 = vrot.lane.b32.xlu0 %v584_v43, %s2485_s26 }
 0x30b   : > { %718 = vrot.lane.b32.xlu1 %v705_v46, %s2485_s26 }
 0x375   : > { %v593_v53 = vpop.permute.xlu0 %592 }
 0x376   : > { %595 = vst.msk [vmem:[#allocation2] sm:$0xff] %vm488_vm2, %v593_v53  ;;  %601 = vst.msk [vmem:[%s2828_s17] sm:$0xff] %vm488_vm2, %v593_v53 }
 0x379   : > { %v714_v54 = vpop.permute.xlu1 %713  ;;  %v598_v55 = vpop.permute.xlu0 %597 }
 0x37a   : > { %716 = vst.msk [vmem:[#allocation4] sm:$0xff] %vm488_vm2, %v714_v54  ;;  %1745 = vst.msk [vmem:[%s2830_s27 + $0x18] sm:$0xff] %vm488_vm2, %v714_v54 }
 0x37b   : > { %600 = vst.msk [vmem:[#allocation3] sm:$0xff] %vm488_vm2, %v598_v55 }
 0x37d   : > { %v719_v56 = vpop.permute.xlu1 %718  ;;  %v726_v57 = vld [vmem:[#allocation2] sm:$0xff] }
 0x37e   : > { %721 = vst.msk [vmem:[#allocation5] sm:$0xff] %vm488_vm2, %v719_v56  ;;  %1856 = vmatmul.mubr.msk.f32.vlgmr.msra.gmra.mxu0 %vm488_vm2, %v726_v57 }
 0x37f   : > { %1870 = vmatpush3.msra.mxu0 %v2834_v4  ;;  %1877 = vmatprep.mubr.msk.f32.mxu0 %vm2482_vm1, %v2481_v6 }
 0x380   : > { %1871 = vmatprep.subr.mxu0 %v2481_v6 }
 0x381   : > { %v848_v58 = vld [vmem:[#allocation4] sm:$0xff]  ;;  %1872 = vmatpush3.msra.mxu0 %v2840_v7 }
 0x382   : > { %1867 = vmatmul.mubr.msk.f32.vlgmr.msra.gmra.mxu1 %vm488_vm2, %v848_v58  ;;  %1873 = vmatprep.subr.mxu0 %v2481_v6  ;;  %v727_v14 = vld [vmem:[#allocation3] sm:$0xff] }
 0x383   : > { %1874 = vmatpush3.msra.mxu0 %v2848_v9  ;;  %1881 = vmatpush3.msra.mxu1 %v2836_v5 }
 0x384   : > { %1875 = vmatprep.subr.mxu0 %v2481_v6  ;;  %1882 = vmatprep.subr.mxu1 %v2481_v6 }
 0x385   : > { %1883 = vmatpush3.msra.mxu1 %v2842_v8  ;;  %1876 = vmatpush3.msra.mxu0 %v2856_v11  ;;  %v849_v15 = vld [vmem:[#allocation5] sm:$0xff] }
 0x386   : > { %1884 = vmatprep.subr.mxu1 %v2481_v6  ;;  %1888 = vmatprep.mubr.msk.f32.mxu1 %vm2482_vm1, %v2481_v6 }
 0x387   : > { %1885 = vmatpush3.msra.mxu1 %v2852_v10  ;;  %1891 = vmatprep.subr.mxu0 %v2481_v6 }
 0x388   : > { %1886 = vmatprep.subr.mxu1 %v2481_v6 }
 0x389   : > { %1887 = vmatpush3.msra.mxu1 %v2861_v13 }
 0x38a   : > { %1902 = vmatprep.subr.mxu1 %v2481_v6 }
 0x43e   : > { %v801_v60 = vpop.f32.mrf.mxu0 }
 0x43f   : > { %v805_v61 = vadd.f32 %v1746_v59, %v801_v60 }
 0x440   : > { %v1857_v62 = vpop.f32.mrf.mxu0 }
 0x441   : > { %2073 = vtanh.f32 %v805_v61  ;;  %v1748_v16 = vmul.f32 -1.442695, %v805_v61 }
 0x442   : > { %v923_v0 = vpop.f32.mrf.mxu1 }
 0x443   : > { %v927_v1 = vadd.f32 %v1750_v63, %v923_v0 }
 0x444   : > { %v1868_v2 = vpop.f32.mrf.mxu1 }
 0x445   : > { %2075 = vtanh.f32 %v927_v1  ;;  %v1752_v17 = vmul.f32 -1.442695, %v927_v1 }
 0x446   : > { %2077 = vpow2.f32 %v1748_v16 }
 0x447   : > { %2079 = vpow2.f32 %v1752_v17 }
 0x44e   : > { %v2074_v3 = vpop.eup %2073 }
 0x44f   : > { %819 = vrot.lane.b32.xlu0 %v2074_v3, %s2484_s0 }
 0x452   : > { %v2076_v12 = vpop.eup %2075 }
 0x453   : > { %941 = vrot.lane.b32.xlu1 %v2076_v12, %s2484_s0  ;;  %814 = vrot.lane.b32.xlu0 %v727_v14, %s2483_s2  ;;  %v2078_v18 = vpop.eup %2077 }
 0x454   : > { %v809_v19 = vadd.f32 1.0, %v2078_v18  ;;  %v2080_v20 = vpop.eup %2079 }
 0x455   : > { %v931_v21 = vadd.f32 1.0, %v2080_v20 }
 0x456   : > { %2081 = vrcp.f32 %v809_v19 }
 0x457   : > { %936 = vrot.lane.b32.xlu1 %v849_v15, %s2483_s2  ;;  %2083 = vrcp.f32 %v931_v21 }
 0x463   : > { %v2082_v22 = vpop.eup %2081 }
 0x464   : > { %v2084_v25 = vpop.eup %2083 }
 0x4c1   : > { %v820_v23 = vpop.permute.xlu0 %819 }
 0x4c2   : > { %v822_v24 = vmul.f32 %v2082_v22, %v820_v23 }
 0x4c4   : > { %824 = vrot.lane.b32.xlu0 %v822_v24, %s2483_s2 }
 0x4c5   : > { %v942_v26 = vpop.permute.xlu1 %941  ;;  %v815_v28 = vpop.permute.xlu0 %814 }
 0x4c6   : > { %v944_v27 = vmul.f32 %v2084_v25, %v942_v26  ;;  %v817_v29 = vmul.f32 %v2082_v22, %v815_v28  ;;  %v1762_v28 = vld [vmem:[%s2800_s28 + $0x18] sm:$0xff] }
 0x4c8   : > { %946 = vrot.lane.b32.xlu1 %v944_v27, %s2483_s2 }
 0x4c9   : > { %v937_v30 = vpop.permute.xlu1 %936 }
 0x4ca   : > { %v939_v33 = vmul.f32 %v2084_v25, %v937_v30 }
 0x536   : > { %v825_v31 = vpop.permute.xlu0 %824 }
 0x537   : > { %v827_v32 = vadd.f32 %v825_v31, %v817_v29 }
 0x539   : > { %2085 = vtanh.f32 %v827_v32 }
 0x53a   : > { %v947_v34 = vpop.permute.xlu1 %946 }
 0x53b   : > { %v949_v35 = vadd.f32 %v947_v34, %v939_v33 }
 0x53d   : > { %2087 = vtanh.f32 %v949_v35 }
 0x546   : > { %v2086_v36 = vpop.eup %2085 }
 0x547   : > { %830 = vrot.lane.b32.xlu0 %v2086_v36, %s2484_s0 }
 0x54a   : > { %v2088_v37 = vpop.eup %2087 }
 0x54b   : > { %952 = vrot.lane.b32.xlu1 %v2088_v37, %s2484_s0 }
 0x5b9   : > { %v831_v38 = vpop.permute.xlu0 %830 }
 0x5ba   : > { %v833_v39 = vmul.f32 %v2082_v22, %v831_v38 }
 0x5bc   : > { %835 = vrot.lane.b32.xlu0 %v833_v39, %s2483_s2 }
 0x5bd   : > { %v953_v40 = vpop.permute.xlu1 %952 }
 0x5be   : > { %v955_v41 = vmul.f32 %v2084_v25, %v953_v40 }
 0x5c0   : > { %957 = vrot.lane.b32.xlu1 %v955_v41, %s2483_s2  ;;  %840 = vrot.lane.b32.xlu0 %v827_v32, %s2485_s26  ;;  %v1334_v32 = vld [vmem:[%s2810_s22] sm:$0xff] }
 0x5c4   : > { %962 = vrot.lane.b32.xlu1 %v949_v35, %s2485_s26 }
 0x62e   : > { %v836_v42 = vpop.permute.xlu0 %835 }
 0x62f   : > { %838 = vst.msk [vmem:[#allocation2] sm:$0xff] %vm488_vm2, %v836_v42  ;;  %1749 = vst.msk [vmem:[%s2828_s17 + $0x8] sm:$0xff] %vm488_vm2, %v836_v42 }
 0x632   : > { %v958_v43 = vpop.permute.xlu1 %957  ;;  %v841_v44 = vpop.permute.xlu0 %840 }
 0x633   : > { %960 = vst.msk [vmem:[#allocation4] sm:$0xff] %vm488_vm2, %v958_v43  ;;  %1753 = vst.msk [vmem:[%s2830_s27 + $0x10] sm:$0xff] %vm488_vm2, %v958_v43 }
 0x634   : > { %843 = vst.msk [vmem:[#allocation3] sm:$0xff] %vm488_vm2, %v841_v44 }
 0x636   : > { %v963_v45 = vpop.permute.xlu1 %962  ;;  %v970_v46 = vld [vmem:[#allocation2] sm:$0xff] }
 0x637   : > { %965 = vst.msk [vmem:[#allocation5] sm:$0xff] %vm488_vm2, %v963_v45  ;;  %1878 = vmatmul.mubr.msk.f32.vlgmr.msra.gmra.mxu0 %vm488_vm2, %v970_v46 }
 0x638   : > { %1892 = vmatpush3.msra.mxu0 %v2834_v4  ;;  %1899 = vmatprep.mubr.msk.f32.mxu0 %vm2482_vm1, %v2481_v6  ;;  %v1754_v4 = vld [vmem:[%s2800_s28 + $0x10] sm:$0xff] }
 0x639   : > { %1893 = vmatprep.subr.mxu0 %v2481_v6 }
 0x63a   : > { %v1092_v47 = vld [vmem:[#allocation4] sm:$0xff]  ;;  %1894 = vmatpush3.msra.mxu0 %v2840_v7 }
 0x63b   : > { %1889 = vmatmul.mubr.msk.f32.vlgmr.msra.gmra.mxu1 %vm488_vm2, %v1092_v47  ;;  %1895 = vmatprep.subr.mxu0 %v2481_v6  ;;  %v971_v52 = vld [vmem:[#allocation3] sm:$0xff] }
 0x63c   : > { %1896 = vmatpush3.msra.mxu0 %v2848_v9  ;;  %1903 = vmatpush3.msra.mxu1 %v2836_v5 }
 0x63d   : > { %1897 = vmatprep.subr.mxu0 %v2481_v6  ;;  %1904 = vmatprep.subr.mxu1 %v2481_v6 }
 0x63e   : > { %1905 = vmatpush3.msra.mxu1 %v2842_v8  ;;  %1898 = vmatpush3.msra.mxu0 %v2856_v11 }
 0x63f   : > { %1906 = vmatprep.subr.mxu1 %v2481_v6  ;;  %1910 = vmatprep.mubr.msk.f32.mxu1 %vm2482_vm1, %v2481_v6 }
 0x640   : > { %1907 = vmatpush3.msra.mxu1 %v2852_v10 }
 0x641   : > { %1908 = vmatprep.subr.mxu1 %v2481_v6  ;;  %v1093_v6 = vld [vmem:[#allocation5] sm:$0xff] }
 0x642   : > { %1909 = vmatpush3.msra.mxu1 %v2861_v13 }
 0x6f7   : > { %v1045_v5 = vpop.f32.mrf.mxu0 }
 0x6f8   : > { %v1049_v7 = vadd.f32 %v1754_v4, %v1045_v5 }
 0x6f9   : > { %v1879_v9 = vpop.f32.mrf.mxu0 }
 0x6fa   : > { %2089 = vtanh.f32 %v1049_v7  ;;  %v1756_v10 = vmul.f32 -1.442695, %v1049_v7 }
 0x6fb   : > { %v1167_v8 = vpop.f32.mrf.mxu1 }
 0x6fc   : > { %v1171_v49 = vadd.f32 %v1758_v48, %v1167_v8 }
 0x6fd   : > { %v1890_v11 = vpop.f32.mrf.mxu1 }
 0x6fe   : > { %2091 = vtanh.f32 %v1171_v49  ;;  %v1760_v13 = vmul.f32 -1.442695, %v1171_v49 }
 0x6ff   : > { %2093 = vpow2.f32 %v1756_v10 }
 0x700   : > { %2095 = vpow2.f32 %v1760_v13 }
 0x707   : > { %v2090_v50 = vpop.eup %2089 }
 0x708   : > { %1063 = vrot.lane.b32.xlu0 %v2090_v50, %s2484_s0 }
 0x70b   : > { %v2092_v51 = vpop.eup %2091 }
 0x70c   : > { %1185 = vrot.lane.b32.xlu1 %v2092_v51, %s2484_s0  ;;  %1058 = vrot.lane.b32.xlu0 %v971_v52, %s2483_s2  ;;  %v2094_v53 = vpop.eup %2093 }
 0x70d   : > { %v1053_v54 = vadd.f32 1.0, %v2094_v53  ;;  %v2096_v55 = vpop.eup %2095 }
 0x70e   : > { %v1175_v56 = vadd.f32 1.0, %v2096_v55 }
 0x70f   : > { %2097 = vrcp.f32 %v1053_v54 }
 0x710   : > { %1180 = vrot.lane.b32.xlu1 %v1093_v6, %s2483_s2  ;;  %2099 = vrcp.f32 %v1175_v56 }
 0x71c   : > { %v2098_v57 = vpop.eup %2097 }
 0x71d   : > { %v2100_v60 = vpop.eup %2099 }
 0x77a   : > { %v1064_v58 = vpop.permute.xlu0 %1063 }
 0x77b   : > { %v1066_v59 = vmul.f32 %v2098_v57, %v1064_v58 }
 0x77d   : > { %1068 = vrot.lane.b32.xlu0 %v1066_v59, %s2483_s2 }
 0x77e   : > { %v1186_v61 = vpop.permute.xlu1 %1185  ;;  %v1059_v63 = vpop.permute.xlu0 %1058 }
 0x77f   : > { %v1188_v62 = vmul.f32 %v2100_v60, %v1186_v61  ;;  %v1061_v0 = vmul.f32 %v2098_v57, %v1059_v63 }
 0x781   : > { %1190 = vrot.lane.b32.xlu1 %v1188_v62, %s2483_s2 }
 0x782   : > { %v1181_v1 = vpop.permute.xlu1 %1180 }
 0x783   : > { %v1183_v12 = vmul.f32 %v2100_v60, %v1181_v1 }
 0x7ef   : > { %v1069_v2 = vpop.permute.xlu0 %1068 }
 0x7f0   : > { %v1071_v3 = vadd.f32 %v1069_v2, %v1061_v0 }
 0x7f2   : > { %2101 = vtanh.f32 %v1071_v3 }
 0x7f3   : > { %v1191_v14 = vpop.permute.xlu1 %1190 }
 0x7f4   : > { %v1193_v15 = vadd.f32 %v1191_v14, %v1183_v12 }
 0x7f6   : > { %2103 = vtanh.f32 %v1193_v15 }
 0x7ff   : > { %v2102_v16 = vpop.eup %2101 }
 0x800   : > { %1074 = vrot.lane.b32.xlu0 %v2102_v16, %s2484_s0 }
 0x803   : > { %v2104_v17 = vpop.eup %2103 }
 0x804   : > { %1196 = vrot.lane.b32.xlu1 %v2104_v17, %s2484_s0 }
 0x872   : > { %v1075_v18 = vpop.permute.xlu0 %1074 }
 0x873   : > { %v1077_v19 = vmul.f32 %v2098_v57, %v1075_v18 }
 0x875   : > { %1079 = vrot.lane.b32.xlu0 %v1077_v19, %s2483_s2 }
 0x876   : > { %v1197_v20 = vpop.permute.xlu1 %1196 }
 0x877   : > { %v1199_v21 = vmul.f32 %v2100_v60, %v1197_v20 }
 0x879   : > { %1201 = vrot.lane.b32.xlu1 %v1199_v21, %s2483_s2  ;;  %1084 = vrot.lane.b32.xlu0 %v1071_v3, %s2485_s26 }
 0x87d   : > { %1206 = vrot.lane.b32.xlu1 %v1193_v15, %s2485_s26 }
 0x8e7   : > { %v1080_v22 = vpop.permute.xlu0 %1079 }
 0x8e8   : > { %1082 = vst.msk [vmem:[#allocation2] sm:$0xff] %vm488_vm2, %v1080_v22  ;;  %1757 = vst.msk [vmem:[%s2828_s17 + $0x10] sm:$0xff] %vm488_vm2, %v1080_v22 }
 0x8eb   : > { %v1202_v23 = vpop.permute.xlu1 %1201  ;;  %v1085_v24 = vpop.permute.xlu0 %1084 }
 0x8ec   : > { %1204 = vst.msk [vmem:[#allocation4] sm:$0xff] %vm488_vm2, %v1202_v23  ;;  %1761 = vst.msk [vmem:[%s2830_s27 + $0x8] sm:$0xff] %vm488_vm2, %v1202_v23 }
 0x8ed   : > { %1087 = vst.msk [vmem:[#allocation3] sm:$0xff] %vm488_vm2, %v1085_v24 }
 0x8ef   : > { %v1207_v25 = vpop.permute.xlu1 %1206  ;;  %v1214_v26 = vld [vmem:[#allocation2] sm:$0xff] }
 0x8f0   : > { %1209 = vst.msk [vmem:[#allocation5] sm:$0xff] %vm488_vm2, %v1207_v25  ;;  %1900 = vmatmul.mubr.msk.f32.vlgmr.msra.gmra.mxu0 %vm488_vm2, %v1214_v26 }
 0x8f3   : > { %v1335_v27 = vld [vmem:[#allocation4] sm:$0xff] }
 0x8f4   : > { %1911 = vmatmul.mubr.msk.f32.vlgmr.msra.gmra.mxu1 %vm488_vm2, %v1335_v27  ;;  %v1215_v38 = vld [vmem:[#allocation3] sm:$0xff] }
 0x8f7   : > { %v1336_v39 = vld [vmem:[#allocation5] sm:$0xff] }
 0x9b0   : > { %v1289_v29 = vpop.f32.mrf.mxu0 }
 0x9b1   : > { %v1293_v30 = vadd.f32 %v1762_v28, %v1289_v29 }
 0x9b2   : > { %v1901_v31 = vpop.f32.mrf.mxu0 }
 0x9b3   : > { %2105 = vtanh.f32 %v1293_v30  ;;  %v1764_v40 = vmul.f32 -1.442695, %v1293_v30 }
 0x9b4   : > { %v1410_v33 = vpop.f32.mrf.mxu1 }
 0x9b5   : > { %v1414_v34 = vadd.f32 %v1410_v33, %v1334_v32 }
 0x9b6   : > { %v1912_v35 = vpop.f32.mrf.mxu1 }
 0x9b7   : > { %2107 = vtanh.f32 %v1414_v34  ;;  %v1767_v41 = vmul.f32 -1.442695, %v1414_v34 }
 0x9b8   : > { %2109 = vpow2.f32 %v1764_v40 }
 0x9b9   : > { %2111 = vpow2.f32 %v1767_v41 }
 0x9c0   : > { %v2106_v36 = vpop.eup %2105 }
 0x9c1   : > { %1307 = vrot.lane.b32.xlu0 %v2106_v36, %s2484_s0 }
 0x9c4   : > { %v2108_v37 = vpop.eup %2107 }
 0x9c5   : > { %1428 = vrot.lane.b32.xlu1 %v2108_v37, %s2484_s0  ;;  %1302 = vrot.lane.b32.xlu0 %v1215_v38, %s2483_s2  ;;  %v2110_v42 = vpop.eup %2109 }
 0x9c6   : > { %v1297_v43 = vadd.f32 1.0, %v2110_v42  ;;  %v2112_v44 = vpop.eup %2111 }
 0x9c7   : > { %v1418_v45 = vadd.f32 1.0, %v2112_v44 }
 0x9c8   : > { %2113 = vrcp.f32 %v1297_v43 }
 0x9c9   : > { %1423 = vrot.lane.b32.xlu1 %v1336_v39, %s2483_s2  ;;  %2115 = vrcp.f32 %v1418_v45 }
 0x9d5   : > { %v2114_v46 = vpop.eup %2113 }
 0x9d6   : > { %v2116_v5 = vpop.eup %2115 }
 0xa33   : > { %v1308_v47 = vpop.permute.xlu0 %1307 }
 0xa34   : > { %v1310_v4 = vmul.f32 %v2114_v46, %v1308_v47 }
 0xa36   : > { %1312 = vrot.lane.b32.xlu0 %v1310_v4, %s2483_s2 }
 0xa37   : > { %v1429_v7 = vpop.permute.xlu1 %1428  ;;  %v1303_v48 = vpop.permute.xlu0 %1302 }
 0xa38   : > { %v1431_v9 = vmul.f32 %v2116_v5, %v1429_v7  ;;  %v1305_v8 = vmul.f32 %v2114_v46, %v1303_v48 }
 0xa3a   : > { %1433 = vrot.lane.b32.xlu1 %v1431_v9, %s2483_s2 }
 0xa3b   : > { %v1424_v49 = vpop.permute.xlu1 %1423 }
 0xa3c   : > { %v1426_v51 = vmul.f32 %v2116_v5, %v1424_v49 }
 0xaa8   : > { %v1313_v11 = vpop.permute.xlu0 %1312 }
 0xaa9   : > { %v1315_v50 = vadd.f32 %v1313_v11, %v1305_v8 }
 0xaab   : > { %2117 = vtanh.f32 %v1315_v50 }
 0xaac   : > { %v1434_v52 = vpop.permute.xlu1 %1433 }
 0xaad   : > { %v1436_v6 = vadd.f32 %v1434_v52, %v1426_v51 }
 0xaaf   : > { %2119 = vtanh.f32 %v1436_v6 }
 0xab8   : > { %v2118_v10 = vpop.eup %2117 }
 0xab9   : > { %1318 = vrot.lane.b32.xlu0 %v2118_v10, %s2484_s0 }
 0xabc   : > { %v2120_v13 = vpop.eup %2119 }
 0xabd   : > { %1439 = vrot.lane.b32.xlu1 %v2120_v13, %s2484_s0 }
 0xac1   : > { %1328 = vrot.lane.b32.xlu1 %v1315_v50, %s2485_s26 }
 0xac5   : > { %1449 = vrot.lane.b32.xlu1 %v1436_v6, %s2485_s26 }
 0xb2b   : > { %v1319_v53 = vpop.permute.xlu0 %1318 }
 0xb2c   : > { %v1321_v54 = vmul.f32 %v2114_v46, %v1319_v53 }
 0xb2e   : > { %1323 = vrot.lane.b32.xlu0 %v1321_v54, %s2483_s2 }
 0xb2f   : > { %v1440_v55 = vpop.permute.xlu1 %1439 }
 0xb30   : > { %v1442_v56 = vmul.f32 %v2116_v5, %v1440_v55 }
 0xb32   : > { %1444 = vrot.lane.b32.xlu0 %v1442_v56, %s2483_s2 }
 0xb33   : > { %v1329_v57 = vpop.permute.xlu1 %1328 }
 0xb34   : > { %1331 = vst.msk [vmem:[#allocation3] sm:$0xff] %vm488_vm2, %v1329_v57 }
 0xb37   : > { %v1450_v58 = vpop.permute.xlu1 %1449 }
 0xb38   : > { %1452 = vst.msk [vmem:[#allocation5] sm:$0xff] %vm488_vm2, %v1450_v58 }
 0xba0   : > { %v1324_v59 = vpop.permute.xlu0 %1323 }
 0xba1   : > { %1326 = vst.msk [vmem:[#allocation2] sm:$0xff] %vm488_vm2, %v1324_v59  ;;  %1765 = vst.msk [vmem:[%s2828_s17 + $0x18] sm:$0xff] %vm488_vm2, %v1324_v59  ;;  %1457 = sbr.rel (%p1768_p11) target bundleno = 2990 (0xbae), region = 76 }
 0xba4   : > { %v1445_v60 = vpop.permute.xlu0 %1444 }
 0xba5   : > { %1447 = vst.msk [vmem:[#allocation4] sm:$0xff] %vm488_vm2, %v1445_v60  ;;  %1453 = vst.msk [vmem:[%s2830_s27] sm:$0xff] %vm488_vm2, %v1445_v60 }
 0xba6   : > { %v1463_v63 = vld [vmem:[#allocation3] sm:$0xff]  ;;  %v1465_v0 = vld [vmem:[#allocation5] sm:$0xff] }
 0xba7   : > { %1464 = vst.msk [vmem:[#allocation21] sm:$0xff] %vm488_vm2, %v1463_v63  ;;  %1467 = vst.msk [vmem:[#allocation21 + $0x8] sm:$0xff] %vm488_vm2, %v1465_v0 }
 0xba8   : > { %v1458_v61 = vld [vmem:[#allocation2] sm:$0xff] }
 0xba9   : > { %1459 = vst.msk [vmem:[#allocation20] sm:$0xff] %vm488_vm2, %v1458_v61 }
 0xbac   : > { %v1460_v62 = vld [vmem:[#allocation4] sm:$0xff] }
 0xbad   : > { %1462 = vst.msk [vmem:[#allocation20 + $0x8] sm:$0xff] %vm488_vm2, %v1460_v62 }
 0xbae PF: > { %s1497_s30 = ssub.s32 3, %s2578_s16  ;;  %s1504_s19 = sshll.u32 %s2830_s27, 4  ;;  %s3038_s19 = int_to_ptr.vmem [resolvable:$true] %s1504_s19 }
 0xbaf   : > { %s1784_s25 = sshll.u32 %s1497_s30, 9  ;;  %s3042_s28 = scalar_lea.sflag [#allocation19], %s395_s18 }
 0xbb0   : > { %s3036_s23 = scalar_lea.hbm %s3166_s7, %s1784_s25  ;;  %s2281_s5 = scalar_lea.vmem %s3038_s19, 512 }
 0xbb1   : > { %p2282_p9 = scmp.ne.s32.totalorder %s3038_s19, %s2281_s5  ;;  %p3231_p0 = scmp.ne.s32.totalorder %s3218_s4, 0 }
 0xbb2   : > { %s2486_s21 = smov [#allocation18]  }
 0xbb3   : > { %p2283_p6 = pnand %p2282_p9, %p3231_p0  ;;  %s2285_s29 = sshll.u32 %s2486_s21, 4  ;;  %s2286_s29 = int_to_ptr.vmem [resolvable:$false] %s2285_s29 }
 0xbb4   : > { %s2287_s22 = scalar_lea.vmem %s2286_s29, 1024  ;;  %p2288_p3 = scmp.lt.s32.totalorder %s3038_s19, %s2286_s29 }
 0xbb5   : > { %p2284_p12 = pneg %p2283_p6  ;;  %p2289_p4 = scmp.lt.s32.totalorder %s2287_s22, %s2281_s5 }
 0xbb7   : > { %p2290_p8 = por %p2289_p4, %p2288_p3 }
 0xbb9   : > { %p2291_p13 = pnand %p2290_p8, %p2284_p12 }
 0xbbb   : > { %2294 = shalt.err (!%p2291_p13)
}
 0xbbc   : > { %s2295_s18 = scalar_lea.hbm %s3036_s23, 512  ;;  %s2299_s0 = scalar_lea.hbm %s3166_s7, 2048 }
 0xbbd   : > { %p2296_p1 = scmp.ne.s32.totalorder %s3036_s23, %s2295_s18  ;;  %p2300_p7 = scmp.lt.s32.totalorder %s3036_s23, %s3166_s7 }
 0xbbe   : > { %p2301_p10 = scmp.lt.s32.totalorder %s2299_s0, %s2295_s18 }
 0xbbf   : > { %p2297_p2 = pnand %p2296_p1, %p3231_p0 }
 0xbc0   : > { %p2302_p11 = por %p2301_p10, %p2300_p7 }
 0xbc1   : > { %p2298_p5 = pneg %p2297_p2 }
 0xbc3   : > { %p2303_p9 = pnand %p2302_p11, %p2298_p5 }
 0xbc5   : > { %2306 = shalt.err (!%p2303_p9)
}
 0xbc6   : > { %s2487_s25 = smov 128   ;;  %s2488_s20 = smov 8  }
 0xbc7   : > { %1934 = dma.vmem_to_hbm [thread:$0]  (%p3231_p0), %s3038_s19, 512, %s3036_s23, %s3042_s28, %s2487_s25, %s2487_s25, %s2488_s20  }
 0xbc8   : > { %s1783_s12 = sshll.u32 %s2578_s16, 9  ;;  %s1487_s22 = sshll.u32 %s2828_s17, 4  ;;  %s3075_s22 = int_to_ptr.vmem [resolvable:$true] %s1487_s22 }
 0xbc9   : > { %s3072_s29 = scalar_lea.hbm %s3165_s6, %s1783_s12  ;;  %s1469_s18 = scalar_lea.sflag [#allocation8], %s2796_s14 }
 0xbca   : > { %s2307_s27 = scalar_lea.vmem %s3075_s22, 512  ;;  %p3232_p12 = scmp.ne.s32.totalorder %s3202_s24, 0 }
 0xbcb   : > { %p2308_p6 = scmp.ne.s32.totalorder %s3075_s22, %s2307_s27  ;;  %s2489_s4 = smov [#allocation17]  }
 0xbcc   : > { %s2311_s19 = sshll.u32 %s2489_s4, 4  ;;  %s2312_s19 = int_to_ptr.vmem [resolvable:$false] %s2311_s19 }
 0xbcd   : > { %p2309_p3 = pnand %p2308_p6, %p3232_p12  ;;  %s2313_s23 = scalar_lea.vmem %s2312_s19, 1024 }
 0xbce   : > { %p2314_p0 = scmp.lt.s32.totalorder %s3075_s22, %s2312_s19  ;;  %p2315_p8 = scmp.lt.s32.totalorder %s2313_s23, %s2307_s27 }
 0xbcf   : > { %p2310_p4 = pneg %p2309_p3 }
 0xbd0   : > { %p2316_p13 = por %p2315_p8, %p2314_p0 }
 0xbd2   : > { %p2317_p1 = pnand %p2316_p13, %p2310_p4 }
 0xbd4   : > { %2320 = shalt.err (!%p2317_p1)
}
 0xbd5   : > { %s2321_s17 = scalar_lea.hbm %s3072_s29, 512  ;;  %s2325_s2 = scalar_lea.hbm %s3165_s6, 2048 }
 0xbd6   : > { %p2322_p2 = scmp.ne.s32.totalorder %s3072_s29, %s2321_s17  ;;  %p2326_p10 = scmp.lt.s32.totalorder %s3072_s29, %s3165_s6 }
 0xbd7   : > { %p2327_p11 = scmp.lt.s32.totalorder %s2325_s2, %s2321_s17 }
 0xbd8   : > { %p2323_p5 = pnand %p2322_p2, %p3232_p12 }
 0xbd9   : > { %p2328_p9 = por %p2327_p11, %p2326_p10 }
 0xbda   : > { %p2324_p7 = pneg %p2323_p5 }
 0xbdc   : > { %p2329_p6 = pnand %p2328_p9, %p2324_p7 }
 0xbde   : > { %2332 = shalt.err (!%p2329_p6)
}
 0xbdf   : > { %1933 = dma.vmem_to_hbm [thread:$0]  (%p3232_p12), %s3075_s22, 512, %s3072_s29, %s1469_s18, %s2487_s25, %s2487_s25, %s2488_s20  }
 0xbe0   : > { %s2490_s30 = smov [#allocation20]   ;;  %s2491_s5 = smov [#allocation21]  }
 0xbe1   : > { %s1517_s12 = sshll.u32 %s2490_s30, 4  ;;  %s1530_s21 = sshll.u32 %s2491_s5, 4  ;;  %s1518_s12 = int_to_ptr.vmem [resolvable:$true] %s1517_s12  ;;  %s1531_s21 = int_to_ptr.vmem [resolvable:$true] %s1530_s21 }
 0xbe2   : > { %s2333_s27 = scalar_lea.vmem %s1518_s12, 256  ;;  %p3233_p4 = scmp.eq.s32.totalorder %s2578_s16, 3 }
 0xbe3   : > { %p2334_p3 = scmp.ne.s32.totalorder %s1518_s12, %s2333_s27  ;;  %p2340_p13 = scmp.lt.s32.totalorder %s1518_s12, %s1518_s12 }
 0xbe4   : > { %p2341_p1 = scmp.lt.s32.totalorder %s2333_s27, %s2333_s27 }
 0xbe5   : > { %p2335_p0 = pnand %p2334_p3, %p3233_p4 }
 0xbe6   : > { %p2342_p2 = por %p2341_p1, %p2340_p13 }
 0xbe7   : > { %p2336_p8 = pneg %p2335_p0 }
 0xbe9   : > { %p2343_p5 = pnand %p2342_p2, %p2336_p8 }
 0xbeb   : > { %2346 = shalt.err (!%p2343_p5)
}
 0xbec   : > { %p3234_p7 = pmov %p3233_p4  ;;  %s2357_s22 = scalar_lea.vmem %s1531_s21, 256 }
 0xbed   : > { %p2358_p12 = scmp.ne.s32.totalorder %s1531_s21, %s2357_s22  ;;  %p3235_p10 = pmov %p3233_p4 }
 0xbee   : > { %1936 = dma.vmem_to_hbm [thread:$0]  (%p3234_p7), %s1518_s12, 256, %s3167_s8, [#allocation19], %s2487_s25, %s2487_s25, %s2488_s20  }
 0xbef   : > { %p2359_p11 = pnand %p2358_p12, %p3235_p10  ;;  %p2364_p6 = scmp.lt.s32.totalorder %s1531_s21, %s1531_s21 }
 0xbf0   : > { %p2365_p3 = scmp.lt.s32.totalorder %s2357_s22, %s2357_s22 }
 0xbf1   : > { %p2360_p9 = pneg %p2359_p11 }
 0xbf2   : > { %p2366_p4 = por %p2365_p3, %p2364_p6 }
 0xbf4   : > { %p2367_p0 = pnand %p2366_p4, %p2360_p9 }
 0xbf6   : > { %2370 = shalt.err (!%p2367_p0)
}
 0xbf7   : > { %p3236_p8 = pmov %p3234_p7  ;;  %p3237_p13 = pmov %p3234_p7 }
 0xbf9   : > { %1938 = dma.vmem_to_hbm [thread:$0]  (%p3236_p8), %s1531_s21, 256, %s3168_s9, [#allocation22], %s2487_s25, %s2487_s25, %s2488_s20  }
 0xbfa   : > { %2430 = dma.done.wait (%p3237_p13), [#allocation19], 256   ;;  %p3238_p1 = pmov %p3234_p7 }
 0xbfc   : > { %2432 = vsyncadd (%p3238_p1), [#allocation19], 4294967040  ;;  %p3239_p2 = pmov %p3238_p1 }
 0xbfd   : > { %p3240_p5 = pmov %p3238_p1 }
 0xbfe   : > { %2434 = dma.done.wait (%p3239_p2), [#allocation22], 256  }
 0xbff   : > { %2436 = vsyncadd (%p3240_p5), [#allocation22], 4294967040 }
 0xc00 PF: > { %s3241_s19 = sld [smem:[#allocation32_spill]]  ;;  %p1985_p7 = scmp.ge.s32.totalorder %s2471_s15, 2 }
 0xc01   : > { %s3242_s23 = sld [smem:[#allocation34_spill]] }
 0xc06   : > { %s1553_s17 = sand.u32 1, %s3241_s19  }
 0xc07   : > { %p3243_p12 = scmp.ne.s32.totalorder %s3242_s23, 0  ;;  %s1554_s25 = scalar_lea.sflag [#allocation8], %s1553_s17 }
 0xc09   : > { %p1966_p10 = pnand %p1985_p7, %p3243_p12 }
 0xc0b   : > { %p1967_p11 = pneg %p1966_p10 }
 0xc0d   : > { %2438 = dma.done.wait (%p1967_p11), %s1554_s25, 512  }
 0xc0e   : > { %2440 = vsyncadd (%p1967_p11), %s1554_s25, 4294966784  ;;  %s3244_s20 = sadd.s32 4294967294, %s2471_s15   ;;  %s3245_s14 = sld [smem:[#allocation35_spill]] }
 0xc0f   : > { %s1562_s28 = sand.u32 1, %s3244_s20  }
 0xc10   : > { %s1563_s16 = scalar_lea.sflag [#allocation19], %s1562_s28 }
 0xc14   : > { %p3246_p9 = scmp.ne.s32.totalorder %s3245_s14, 0 }
 0xc16   : > { %p1969_p6 = pnand %p1985_p7, %p3246_p9 }
 0xc18   : > { %p1970_p3 = pneg %p1969_p6 }
 0xc1a   : > { %2442 = dma.done.wait (%p1970_p3), %s1563_s16, 512  }
 0xc1b   : > { %2444 = vsyncadd (%p1970_p3), %s1563_s16, 4294966784  ;;  %s3247_s2 = sld [smem:[#allocation37_spill]]  ;;  %p32_p4 = scmp.ge.s32.totalorder %s2705_s3, 6  }
 0xc1c   : > { %s3248_s0 = sld [smem:[#allocation33_spill]]  ;;  %s3250_s30 = smov %s2451_s10 }
 0xc1d   : > { %s3249_s14 = sld [smem:[#allocation36_spill]]  ;;  %s3251_s10 = smov %s2455_s11 }
 0xc1e   : > { %s3253_s12 = smov %s2463_s13  ;;  %s3255_s15 = smov %s2705_s3 }
 0xc1f   :  { %34 = sbr.rel (!%p32_p4) target bundleno = 20 (0x14), region = 175 }
 0xc21   : > { %s3252_s11 = smov %s3247_s2 }
 0xc22   : > { %s3254_s13 = smov %s3248_s0 }
 0xc24   :  { %1568 = vsyncpa [#allocation7], 1 }
 0xc25   :  { %1570 = vsyncpa [#allocation7 + $0x1], 1 }
 0xc26   :  { %1571 = vsyncpa [#allocation10], 1 }
 0xc27   :  { %1573 = vsyncpa [#allocation10 + $0x1], 1 }
 0xc28   :  { %1574 = vsyncpa [#allocation13], 1 }
 0xc29   :  { %1575 = vsyncpa [#allocation16], 1 }
 0xc2a   :  { %1576 = vsyncpa [#allocation8], 1 }
 0xc2b   :  { %1578 = vsyncpa [#allocation8 + $0x1], 1 }
 0xc2c   :  { %1579 = vsyncpa [#allocation19], 1 }
 0xc2d   :  { %1581 = vsyncpa [#allocation19 + $0x1], 1 }
 0xc2e   :  { %1582 = vsyncpa [#allocation22], 1 }

</bundles_post_ra>
